<compile_context>
chip_gen: v7x
topology: tpu7x:2x2x1
jax: 0.10.0
libtpu: 0.0.40
codegen_flags: <defaults>
</compile_context>

<pallas_src>
import functools
import math

import jax
import jax.numpy as jnp
from jax.experimental import pallas as pl
from jax.experimental.pallas import tpu as pltpu

_LN_EPS = 1e-5  # PyTorch LayerNorm default


def _layer_norm(v, gamma, beta, eps=_LN_EPS):
    """One-pass LayerNorm stats (sum and sum-of-squares)."""
    n = v.shape[-1]
    s = jnp.sum(v, axis=-1, keepdims=True)
    sq = jnp.sum(v * v, axis=-1, keepdims=True)
    mu = s * (1.0 / n)
    var = jnp.maximum(sq * (1.0 / n) - mu * mu, 0.0)
    return (v - mu) * jax.lax.rsqrt(var + eps) * gamma + beta


def _round_up(x, m):
    return ((x + m - 1) // m) * m


# ----------------------------------------------------------------------------
# Fused kernel:
#   streamed [Linear(K->D) + LayerNorm + ReLU] -> mean-over-time pool
#   -> (finalize) DeepMLPResNet: L x [LN -> Lin(D,H) -> ReLU -> Lin(H,D) -> LN
#                                     -> + post-LN residual] -> Linear(D,P)
# ----------------------------------------------------------------------------
def _fused_forward_kernel(x_ref, w_ref, b_ref, g_ref, beta_ref,
                          lng_ref, lnb_ref, w1_ref, b1_ref, w2_ref, b2_ref,
                          ln2g_ref, ln2b_ref, wf_ref, bf_ref,
                          o_ref, acc_ref,
                          *, seq_len, padded_len, t_tile, num_layers):
    ti = pl.program_id(1)

    @pl.when(ti == 0)
    def _():
        acc_ref[...] = jnp.zeros_like(acc_ref)

    # ---- dim_reducer on the streamed tile (bf16 matmul, f32 accumulate) ----
    xb = x_ref[0]                                            # (t_tile, K) bf16
    y = jnp.dot(xb, w_ref[...], preferred_element_type=jnp.float32) + b_ref[...]
    y = _layer_norm(y, g_ref[...], beta_ref[...])
    y = jnp.maximum(y, 0.0)                                  # ReLU

    if padded_len != seq_len:                                # static: only when padded
        row = ti * t_tile + jax.lax.broadcasted_iota(jnp.int32, y.shape, 0)
        y = jnp.where(row < seq_len, y, 0.0)                 # drop padded rows

    acc_ref[...] += jnp.sum(y, axis=0, keepdims=True)        # partial time sum

    # ---- finalize: pool + fused DeepMLPResNet projection, single write -----
    @pl.when(ti == pl.num_programs(1) - 1)
    def _():
        h = acc_ref[...] * (1.0 / seq_len)                   # (1, D) pooled row
        for l in range(num_layers):                          # static unroll
            xn = _layer_norm(h, lng_ref[l], lnb_ref[l])
            z = jnp.dot(xn.astype(jnp.bfloat16), w1_ref[l],
                        preferred_element_type=jnp.float32) + b1_ref[l]
            z = jnp.maximum(z, 0.0)
            z = jnp.dot(z.astype(jnp.bfloat16), w2_ref[l],
                        preferred_element_type=jnp.float32) + b2_ref[l]
            # ResBlockLayerNorm residual adds the POST-input-LayerNorm tensor
            # (matches torch: `return norm2(z) + x` with x = norm_input(input)).
            h = _layer_norm(z, ln2g_ref[l], ln2b_ref[l]) + xn
        out = jnp.dot(h.astype(jnp.bfloat16), wf_ref[...],
                      preferred_element_type=jnp.float32) + bf_ref[...]
        o_ref[0] = out.astype(o_ref.dtype)


def fused_forward(x, p, *, num_layers, max_tile_rows=2048):
    """x: (B, T, K) f32 -> (B, P) f32 (full module forward, fused)."""
    B, T, K = x.shape
    D = p["dr_w"].shape[1]
    L, _, H = p["w1"].shape
    P = p["wf"].shape[1]
    assert L == num_layers

    # --- sequence tile: multiple of 8, <= ~6 MiB per (bf16) buffer, <= 2048
    #     rows (bigger tiles buy ~nothing and crowd out VMEM, esp. on v7x).
    per_buf_cap = 6 * 1024 * 1024
    cap_rows = max(8, min(int(max_tile_rows), per_buf_cap // (K * 2)))
    cap_rows = (cap_rows // 8) * 8
    t_tile = min(cap_rows, _round_up(T, 8))
    t_pad = _round_up(T, t_tile)

    xb = x.astype(jnp.bfloat16)                              # halve the HBM stream
    if t_pad != T:
        xb = jnp.pad(xb, ((0, 0), (0, t_pad - T), (0, 0)))   # masked in-kernel

    w_bf = p["dr_w"].astype(jnp.bfloat16)
    w1_bf = p["w1"].astype(jnp.bfloat16)
    w2_bf = p["w2"].astype(jnp.bfloat16)
    wf_bf = p["wf"].astype(jnp.bfloat16)

    grid = (B, t_pad // t_tile)

    # --- VMEM limit derived from the actual allocations (+50% headroom),
    #     clamped to [8 MiB, 48 MiB] so it also fits v7x's 64 MiB VMEM.
    x_bytes = 2 * t_tile * K * 2                              # double-buffered x tile
    dr_bytes = 2 * (K * D * 2 + 3 * D * 4)                    # reducer weights
    proj_bytes = 2 * (L * ((D * H + H * D) * 2 + (4 * D + H) * 4)
                      + D * P * 2 + P * 4)                    # projection weights
    out_bytes = 2 * P * 4
    scratch_bytes = D * 4
    vmem_limit = int(1.5 * (x_bytes + dr_bytes + proj_bytes + out_bytes
                            + scratch_bytes)) + (2 << 20)
    vmem_limit = min(max(vmem_limit, 8 << 20), 48 << 20)

    cost = pl.CostEstimate(
        flops=2 * B * t_pad * K * D
              + B * (num_layers * 4 * D * H + 2 * D * P),
        transcendentals=B * (t_pad + 2 * num_layers + 1),
        bytes_accessed=B * t_pad * K * 2 + K * D * 2 + 3 * D * 4
              + L * ((D * H + H * D) * 2 + (4 * D + H) * 4)
              + D * P * 2 + P * 4 + B * P * 4,
    )

    out = pl.pallas_call(
        functools.partial(_fused_forward_kernel, seq_len=T, padded_len=t_pad,
                          t_tile=t_tile, num_layers=num_layers),
        out_shape=jax.ShapeDtypeStruct((B, 1, P), jnp.float32),
        grid_spec=pltpu.PrefetchScalarGridSpec(
            num_scalar_prefetch=0,
            grid=grid,
            in_specs=[
                # streamed input tile
                pl.BlockSpec((1, t_tile, K), lambda bi, ti: (bi, ti, 0)),
                # dim_reducer weights (resident, constant index_map)
                pl.BlockSpec((K, D), lambda bi, ti: (0, 0)),
                pl.BlockSpec((1, D), lambda bi, ti: (0, 0)),
                pl.BlockSpec((1, D), lambda bi, ti: (0, 0)),
                pl.BlockSpec((1, D), lambda bi, ti: (0, 0)),
                # DeepMLPResNet weights (resident, constant index_map)
                pl.BlockSpec((L, 1, D), lambda bi, ti: (0, 0, 0)),
                pl.BlockSpec((L, 1, D), lambda bi, ti: (0, 0, 0)),
                pl.BlockSpec((L, D, H), lambda bi, ti: (0, 0, 0)),
                pl.BlockSpec((L, 1, H), lambda bi, ti: (0, 0, 0)),
                pl.BlockSpec((L, H, D), lambda bi, ti: (0, 0, 0)),
                pl.BlockSpec((L, 1, D), lambda bi, ti: (0, 0, 0)),
                pl.BlockSpec((L, 1, D), lambda bi, ti: (0, 0, 0)),
                pl.BlockSpec((L, 1, D), lambda bi, ti: (0, 0, 0)),
                pl.BlockSpec((D, P), lambda bi, ti: (0, 0)),
                pl.BlockSpec((1, P), lambda bi, ti: (0, 0)),
            ],
            out_specs=pl.BlockSpec((1, 1, P), lambda bi, ti: (bi, 0, 0)),
            scratch_shapes=[pltpu.VMEM((1, D), jnp.float32)],
        ),
        compiler_params=pltpu.CompilerParams(
            dimension_semantics=("parallel", "arbitrary"),
            vmem_limit_bytes=vmem_limit,
        ),
        cost_estimate=cost,
    )(xb, w_bf, p["dr_b"], p["dr_g"], p["dr_beta"],
      p["ln_in_g"], p["ln_in_b"], w1_bf, p["b1"], w2_bf, p["b2"],
      p["ln2_g"], p["ln2_b"], wf_bf, p["bf"])
    return out[:, 0, :]   # torch: pooling(x).squeeze() with output_length == 1


# ----------------------------------------------------------------------------
# Module wrapper
# ----------------------------------------------------------------------------
def init_params(key, *, backbone_hidden=768, num_transformer_dims=128,
                nhidden=256, num_projection_dims=128, num_layers=2):
    K, D, H, P, L = (backbone_hidden, num_transformer_dims, nhidden,
                     num_projection_dims, num_layers)
    ks = jax.random.split(key, 14)

    def lin(k, fan_in, shape):
        return jax.random.normal(k, shape, jnp.float32) / math.sqrt(fan_in)

    return {
        # dim_reducer
        "dr_w": lin(ks[0], K, (K, D)),
        "dr_b": 0.02 * jax.random.normal(ks[1], (1, D), jnp.float32),
        "dr_g": 1.0 + 0.05 * jax.random.normal(ks[2], (1, D), jnp.float32),
        "dr_beta": 0.05 * jax.random.normal(ks[3], (1, D), jnp.float32),
        # DeepMLPResNet (stacked per residual block)
        "ln_in_g": 1.0 + 0.05 * jax.random.normal(ks[4], (L, 1, D), jnp.float32),
        "ln_in_b": 0.05 * jax.random.normal(ks[5], (L, 1, D), jnp.float32),
        "w1": lin(ks[6], D, (L, D, H)),
        "b1": 0.02 * jax.random.normal(ks[7], (L, 1, H), jnp.float32),
        "w2": lin(ks[8], H, (L, H, D)),
        "b2": 0.02 * jax.random.normal(ks[9], (L, 1, D), jnp.float32),
        "ln2_g": 1.0 + 0.05 * jax.random.normal(ks[10], (L, 1, D), jnp.float32),
        "ln2_b": 0.05 * jax.random.normal(ks[11], (L, 1, D), jnp.float32),
        # final projection Linear(D -> P)
        "wf": lin(ks[12], D, (D, P)),
        "bf": 0.02 * jax.random.normal(ks[13], (1, P), jnp.float32),
    }


class AudioEmotionFeatureExtractorTransformer:
    """JAX/Pallas port of the PyTorch module (pretrained_model=None, eval mode)."""

    def __init__(self, key, **dims):
        self.no_feature_extraction = True   # pretrained_model is None
        self.num_layers = dims.get("num_layers", 2)
        self.params = init_params(key, **dims)

    def extract_backbone_features(self, x):
        # identity when no_feature_extraction=True (pretrained backbone is external)
        return x

    def __call__(self, x, *, max_tile_rows=2048):
        x = self.extract_backbone_features(x)
        return fused_forward(x, self.params, num_layers=self.num_layers,
                             max_tile_rows=max_tile_rows)


# ----------------------------------------------------------------------------
# Pure-JAX reference.  It mirrors the kernel's *intentional* precision policy
# (bf16 matmul operands, f32 accumulation / LayerNorm), so the comparison
# validates the kernel implementation tightly.
# ----------------------------------------------------------------------------
def reference_forward(x, p, num_layers):
    bf = jnp.bfloat16
    y = jnp.einsum("btk,kd->btd", x.astype(bf), p["dr_w"].astype(bf),
                   preferred_element_type=jnp.float32) + p["dr_b"]
    y = _layer_norm(y, p["dr_g"], p["dr_beta"])
    y = jnp.maximum(y, 0.0)
    h = jnp.mean(y, axis=1)               # stand-in pooling + squeeze
    for l in range(num_layers):
        xn = _layer_norm(h, p["ln_in_g"][l], p["ln_in_b"][l])
        z = jnp.dot(xn.astype(bf), p["w1"][l].astype(bf),
                    preferred_element_type=jnp.float32) + p["b1"][l]
        z = jnp.maximum(z, 0.0)
        z = jnp.dot(z.astype(bf), p["w2"][l].astype(bf),
                    preferred_element_type=jnp.float32) + p["b2"][l]
        h = _layer_norm(z, p["ln2_g"][l], p["ln2_b"][l]) + xn
    return jnp.dot(h.astype(bf), p["wf"].astype(bf),
                   preferred_element_type=jnp.float32) + p["bf"]


if __name__ == "__main__":
    key = jax.random.PRNGKey(0)
    k_param, k_x = jax.random.split(key)

    # Small shapes consistent with the module defaults.  T=20 (not a multiple
    # of 8) + max_tile_rows=8 exercises padding/masking AND the multi-step
    # streamed reduction with the fused projection finalize.
    B, T = 2, 20
    K, D, H, P, L = 768, 128, 256, 128, 2

    model = AudioEmotionFeatureExtractorTransformer(
        k_param, backbone_hidden=K, num_transformer_dims=D,
        nhidden=H, num_projection_dims=P, num_layers=L)

    x = jax.random.normal(k_x, (B, T, K), jnp.float32)

    out = jax.block_until_ready(model(x, max_tile_rows=8))
    assert out.shape == (B, P), out.shape

    ref = reference_forward(x, model.params, num_layers=L)
    err = float(jnp.max(jnp.abs(out - ref)))
    assert jnp.allclose(out, ref, atol=2e-2, rtol=2e-2), (
        f"mismatch vs reference, max abs err = {err}")

    print("KERNEL_OK")
</pallas_src>

<mosaic_0001>
module attributes {stable_mosaic.version = 11 : i64} {
  func.func @_fused_forward_kernel(%arg0: i32, %arg1: i32, %arg2: memref<1x8x768xbf16, #tpu.memory_space<vmem>>, %arg3: memref<768x128xbf16, #tpu.memory_space<vmem>>, %arg4: memref<1x128xf32, #tpu.memory_space<vmem>>, %arg5: memref<1x128xf32, #tpu.memory_space<vmem>>, %arg6: memref<1x128xf32, #tpu.memory_space<vmem>>, %arg7: memref<2x1x128xf32, #tpu.memory_space<vmem>>, %arg8: memref<2x1x128xf32, #tpu.memory_space<vmem>>, %arg9: memref<2x128x256xbf16, #tpu.memory_space<vmem>>, %arg10: memref<2x1x256xf32, #tpu.memory_space<vmem>>, %arg11: memref<2x256x128xbf16, #tpu.memory_space<vmem>>, %arg12: memref<2x1x128xf32, #tpu.memory_space<vmem>>, %arg13: memref<2x1x128xf32, #tpu.memory_space<vmem>>, %arg14: memref<2x1x128xf32, #tpu.memory_space<vmem>>, %arg15: memref<128x128xbf16, #tpu.memory_space<vmem>>, %arg16: memref<1x128xf32, #tpu.memory_space<vmem>>, %arg17: memref<1x1x128xf32, #tpu.memory_space<vmem>>, %arg18: memref<1x128xf32, #tpu.memory_space<vmem>>) attributes {dimension_semantics = [#tpu.dimension_semantics<parallel>, #tpu.dimension_semantics<arbitrary>], iteration_bounds = array<i64: 2, 3>, scalar_prefetch = 0 : i64, scratch_operands = 1 : i64, tpu.core_type = #tpu.core_type<tc>, window_params = [{transform_indices = @transform_0, window_bounds = array<i64: 1, 8, 768>}, {pipeline_mode = #tpu.pipeline_mode<synchronous>, transform_indices = @transform_1, window_bounds = array<i64: 768, 128>}, {pipeline_mode = #tpu.pipeline_mode<synchronous>, transform_indices = @transform_2, window_bounds = array<i64: 1, 128>}, {pipeline_mode = #tpu.pipeline_mode<synchronous>, transform_indices = @transform_3, window_bounds = array<i64: 1, 128>}, {pipeline_mode = #tpu.pipeline_mode<synchronous>, transform_indices = @transform_4, window_bounds = array<i64: 1, 128>}, {pipeline_mode = #tpu.pipeline_mode<synchronous>, transform_indices = @transform_5, window_bounds = array<i64: 2, 1, 128>}, {pipeline_mode = #tpu.pipeline_mode<synchronous>, transform_indices = @transform_6, window_bounds = array<i64: 2, 1, 128>}, {pipeline_mode = #tpu.pipeline_mode<synchronous>, transform_indices = @transform_7, window_bounds = array<i64: 2, 128, 256>}, {pipeline_mode = #tpu.pipeline_mode<synchronous>, transform_indices = @transform_8, window_bounds = array<i64: 2, 1, 256>}, {pipeline_mode = #tpu.pipeline_mode<synchronous>, transform_indices = @transform_9, window_bounds = array<i64: 2, 256, 128>}, {pipeline_mode = #tpu.pipeline_mode<synchronous>, transform_indices = @transform_10, window_bounds = array<i64: 2, 1, 128>}, {pipeline_mode = #tpu.pipeline_mode<synchronous>, transform_indices = @transform_11, window_bounds = array<i64: 2, 1, 128>}, {pipeline_mode = #tpu.pipeline_mode<synchronous>, transform_indices = @transform_12, window_bounds = array<i64: 2, 1, 128>}, {pipeline_mode = #tpu.pipeline_mode<synchronous>, transform_indices = @transform_13, window_bounds = array<i64: 128, 128>}, {pipeline_mode = #tpu.pipeline_mode<synchronous>, transform_indices = @transform_14, window_bounds = array<i64: 1, 128>}, {transform_indices = @transform_15, window_bounds = array<i64: 1, 1, 128>}]} {
    %c0_i32 = arith.constant 0 : i32
    %0 = arith.cmpi eq, %arg1, %c0_i32 : i32
    %1 = arith.extui %0 : i1 to i32
    %c0_i32_0 = arith.constant 0 : i32
    %2 = arith.cmpi ne, %1, %c0_i32_0 : i32
    scf.if %2 {
      %cst_25 = arith.constant 0.000000e+00 : f32
      %54 = vector.broadcast %cst_25 : f32 to vector<1x128xf32>
      %c0_26 = arith.constant 0 : index
      %c0_27 = arith.constant 0 : index
      %55 = vector.load %arg18[%c0_26, %c0_27] : memref<1x128xf32, #tpu.memory_space<vmem>>, vector<1x128xf32>
      tpu.vector_store %arg18[%c0_26, %c0_27], %54 {strides = array<i32>} : memref<1x128xf32, #tpu.memory_space<vmem>>, vector<1x128xf32>,
    } else {
    }
    %c0 = arith.constant 0 : index
    %c0_1 = arith.constant 0 : index
    %c0_2 = arith.constant 0 : index
    %3 = vector.load %arg2[%c0, %c0_1, %c0_2] : memref<1x8x768xbf16, #tpu.memory_space<vmem>>, vector<1x8x768xbf16>
    %4 = vector.shape_cast %3 : vector<1x8x768xbf16> to vector<8x768xbf16>
    %c0_3 = arith.constant 0 : index
    %c0_4 = arith.constant 0 : index
    %5 = vector.load %arg3[%c0_3, %c0_4] : memref<768x128xbf16, #tpu.memory_space<vmem>>, vector<768x128xbf16>
    %cst = arith.constant dense<0.000000e+00> : vector<8x128xf32>
    %6 = tpu.matmul %4, %5, %cst {dimension_numbers = #tpu.dot_dimension_numbers<[1], [0], [0], [1], [0, 0, 1, 1], [], []>} : vector<8x768xbf16>, vector<768x128xbf16>, vector<8x128xf32> -> vector<8x128xf32>
    %c0_5 = arith.constant 0 : index
    %c0_6 = arith.constant 0 : index
    %7 = vector.load %arg4[%c0_5, %c0_6] : memref<1x128xf32, #tpu.memory_space<vmem>>, vector<1x128xf32>
    %8 = vector.broadcast %7 : vector<1x128xf32> to vector<8x128xf32>
    %9 = arith.addf %6, %8 : vector<8x128xf32>
    %c0_7 = arith.constant 0 : index
    %c0_8 = arith.constant 0 : index
    %10 = vector.load %arg5[%c0_7, %c0_8] : memref<1x128xf32, #tpu.memory_space<vmem>>, vector<1x128xf32>
    %c0_9 = arith.constant 0 : index
    %c0_10 = arith.constant 0 : index
    %11 = vector.load %arg6[%c0_9, %c0_10] : memref<1x128xf32, #tpu.memory_space<vmem>>, vector<1x128xf32>
    %cst_11 = arith.constant dense<0.000000e+00> : vector<8xf32>
    %12 = vector.multi_reduction <add>, %9, %cst_11 [1] : vector<8x128xf32> to vector<8xf32>
    %13 = vector.shape_cast %12 : vector<8xf32> to vector<8x1xf32>
    %14 = arith.mulf %9, %9 : vector<8x128xf32>
    %cst_12 = arith.constant dense<0.000000e+00> : vector<8xf32>
    %15 = vector.multi_reduction <add>, %14, %cst_12 [1] : vector<8x128xf32> to vector<8xf32>
    %16 = vector.shape_cast %15 : vector<8xf32> to vector<8x1xf32>
    %cst_13 = arith.constant 7.812500e-03 : f32
    %17 = vector.broadcast %cst_13 : f32 to vector<8x1xf32>
    %18 = arith.mulf %13, %17 : vector<8x1xf32>
    %cst_14 = arith.constant 7.812500e-03 : f32
    %19 = vector.broadcast %cst_14 : f32 to vector<8x1xf32>
    %20 = arith.mulf %16, %19 : vector<8x1xf32>
    %21 = arith.mulf %18, %18 : vector<8x1xf32>
    %22 = arith.subf %20, %21 : vector<8x1xf32>
    %cst_15 = arith.constant 0.000000e+00 : f32
    %23 = vector.broadcast %cst_15 : f32 to vector<8x1xf32>
    %24 = arith.maximumf %22, %23 : vector<8x1xf32>
    %25 = vector.broadcast %18 : vector<8x1xf32> to vector<8x128xf32>
    %26 = arith.subf %9, %25 : vector<8x128xf32>
    %cst_16 = arith.constant 9.99999974E-6 : f32
    %27 = vector.broadcast %cst_16 : f32 to vector<8x1xf32>
    %28 = arith.addf %24, %27 : vector<8x1xf32>
    %29 = math.rsqrt %28 : vector<8x1xf32>
    %30 = vector.broadcast %29 : vector<8x1xf32> to vector<8x128xf32>
    %31 = arith.mulf %26, %30 : vector<8x128xf32>
    %32 = vector.broadcast %10 : vector<1x128xf32> to vector<8x128xf32>
    %33 = arith.mulf %31, %32 : vector<8x128xf32>
    %34 = vector.broadcast %11 : vector<1x128xf32> to vector<8x128xf32>
    %35 = arith.addf %33, %34 : vector<8x128xf32>
    %cst_17 = arith.constant 0.000000e+00 : f32
    %36 = vector.broadcast %cst_17 : f32 to vector<8x128xf32>
    %37 = arith.maximumf %35, %36 : vector<8x128xf32>
    %c8_i32 = arith.constant 8 : i32
    %38 = arith.muli %arg1, %c8_i32 : i32
    %39 = tpu.iota {dimensions = array<i32: 0>} : vector<8x128xi32>
    %40 = vector.broadcast %38 : i32 to vector<8x128xi32>
    %41 = arith.addi %40, %39 : vector<8x128xi32>
    %c20_i32 = arith.constant 20 : i32
    %42 = vector.broadcast %c20_i32 : i32 to vector<8x128xi32>
    %43 = arith.cmpi slt, %41, %42 : vector<8x128xi32>
    %cst_18 = arith.constant 0.000000e+00 : f32
    %44 = vector.broadcast %cst_18 : f32 to vector<8x128xf32>
    %45 = arith.select %43, %37, %44 : vector<8x128xi1>, vector<8x128xf32>
    %c0_19 = arith.constant 0 : index
    %c0_20 = arith.constant 0 : index
    %46 = vector.load %arg18[%c0_19, %c0_20] : memref<1x128xf32, #tpu.memory_space<vmem>>, vector<1x128xf32>
    %cst_21 = arith.constant dense<0.000000e+00> : vector<128xf32>
    %47 = vector.multi_reduction <add>, %45, %cst_21 [0] : vector<8x128xf32> to vector<128xf32>
    %48 = vector.shape_cast %47 : vector<128xf32> to vector<1x128xf32>
    %49 = arith.addf %46, %48 : vector<1x128xf32>
    %c0_22 = arith.constant 0 : index
    %c0_23 = arith.constant 0 : index
    %50 = vector.load %arg18[%c0_22, %c0_23] : memref<1x128xf32, #tpu.memory_space<vmem>>, vector<1x128xf32>
    tpu.vector_store %arg18[%c0_22, %c0_23], %49 {strides = array<i32>} : memref<1x128xf32, #tpu.memory_space<vmem>>, vector<1x128xf32>,
    %c2_i32 = arith.constant 2 : i32
    %51 = arith.cmpi eq, %arg1, %c2_i32 : i32
    %52 = arith.extui %51 : i1 to i32
    %c0_i32_24 = arith.constant 0 : i32
    %53 = arith.cmpi ne, %52, %c0_i32_24 : i32
    scf.if %53 {
      %c0_25 = arith.constant 0 : index
      %c0_26 = arith.constant 0 : index
      %54 = vector.load %arg18[%c0_25, %c0_26] : memref<1x128xf32, #tpu.memory_space<vmem>>, vector<1x128xf32>
      %cst_27 = arith.constant 5.000000e-02 : f32
      %55 = vector.broadcast %cst_27 : f32 to vector<1x128xf32>
      %56 = arith.mulf %54, %55 : vector<1x128xf32>
      %c0_28 = arith.constant 0 : index
      %c0_29 = arith.constant 0 : index
      %c0_30 = arith.constant 0 : index
      %57 = vector.load %arg7[%c0_28, %c0_29, %c0_30] : memref<2x1x128xf32, #tpu.memory_space<vmem>>, vector<1x1x128xf32>
      %58 = vector.shape_cast %57 : vector<1x1x128xf32> to vector<1x128xf32>
      %c0_31 = arith.constant 0 : index
      %c0_32 = arith.constant 0 : index
      %c0_33 = arith.constant 0 : index
      %59 = vector.load %arg8[%c0_31, %c0_32, %c0_33] : memref<2x1x128xf32, #tpu.memory_space<vmem>>, vector<1x1x128xf32>
      %60 = vector.shape_cast %59 : vector<1x1x128xf32> to vector<1x128xf32>
      %cst_34 = arith.constant dense<0.000000e+00> : vector<1xf32>
      %61 = vector.multi_reduction <add>, %56, %cst_34 [1] : vector<1x128xf32> to vector<1xf32>
      %62 = vector.shape_cast %61 : vector<1xf32> to vector<1x1xf32>
      %63 = arith.mulf %56, %56 : vector<1x128xf32>
      %cst_35 = arith.constant dense<0.000000e+00> : vector<1xf32>
      %64 = vector.multi_reduction <add>, %63, %cst_35 [1] : vector<1x128xf32> to vector<1xf32>
      %65 = vector.shape_cast %64 : vector<1xf32> to vector<1x1xf32>
      %cst_36 = arith.constant 7.812500e-03 : f32
      %66 = vector.broadcast %cst_36 : f32 to vector<1x1xf32>
      %67 = arith.mulf %62, %66 : vector<1x1xf32>
      %cst_37 = arith.constant 7.812500e-03 : f32
      %68 = vector.broadcast %cst_37 : f32 to vector<1x1xf32>
      %69 = arith.mulf %65, %68 : vector<1x1xf32>
      %70 = arith.mulf %67, %67 : vector<1x1xf32>
      %71 = arith.subf %69, %70 : vector<1x1xf32>
      %cst_38 = arith.constant 0.000000e+00 : f32
      %72 = vector.broadcast %cst_38 : f32 to vector<1x1xf32>
      %73 = arith.maximumf %71, %72 : vector<1x1xf32>
      %74 = vector.broadcast %67 : vector<1x1xf32> to vector<1x128xf32>
      %75 = arith.subf %56, %74 : vector<1x128xf32>
      %cst_39 = arith.constant 9.99999974E-6 : f32
      %76 = vector.broadcast %cst_39 : f32 to vector<1x1xf32>
      %77 = arith.addf %73, %76 : vector<1x1xf32>
      %78 = math.rsqrt %77 : vector<1x1xf32>
      %79 = vector.broadcast %78 : vector<1x1xf32> to vector<1x128xf32>
      %80 = arith.mulf %75, %79 : vector<1x128xf32>
      %81 = arith.mulf %80, %58 : vector<1x128xf32>
      %82 = arith.addf %81, %60 : vector<1x128xf32>
      %83 = arith.truncf %82 : vector<1x128xf32> to vector<1x128xbf16>
      %c0_40 = arith.constant 0 : index
      %c0_41 = arith.constant 0 : index
      %c0_42 = arith.constant 0 : index
      %84 = vector.load %arg9[%c0_40, %c0_41, %c0_42] : memref<2x128x256xbf16, #tpu.memory_space<vmem>>, vector<1x128x256xbf16>
      %85 = vector.shape_cast %84 : vector<1x128x256xbf16> to vector<128x256xbf16>
      %cst_43 = arith.constant dense<0.000000e+00> : vector<1x256xf32>
      %86 = tpu.matmul %83, %85, %cst_43 {dimension_numbers = #tpu.dot_dimension_numbers<[1], [0], [0], [1], [0, 0, 1, 1], [], []>} : vector<1x128xbf16>, vector<128x256xbf16>, vector<1x256xf32> -> vector<1x256xf32>
      %c0_44 = arith.constant 0 : index
      %c0_45 = arith.constant 0 : index
      %c0_46 = arith.constant 0 : index
      %87 = vector.load %arg10[%c0_44, %c0_45, %c0_46] : memref<2x1x256xf32, #tpu.memory_space<vmem>>, vector<1x1x256xf32>
      %88 = vector.shape_cast %87 : vector<1x1x256xf32> to vector<1x256xf32>
      %89 = arith.addf %86, %88 : vector<1x256xf32>
      %cst_47 = arith.constant 0.000000e+00 : f32
      %90 = vector.broadcast %cst_47 : f32 to vector<1x256xf32>
      %91 = arith.maximumf %89, %90 : vector<1x256xf32>
      %92 = arith.truncf %91 : vector<1x256xf32> to vector<1x256xbf16>
      %c0_48 = arith.constant 0 : index
      %c0_49 = arith.constant 0 : index
      %c0_50 = arith.constant 0 : index
      %93 = vector.load %arg11[%c0_48, %c0_49, %c0_50] : memref<2x256x128xbf16, #tpu.memory_space<vmem>>, vector<1x256x128xbf16>
      %94 = vector.shape_cast %93 : vector<1x256x128xbf16> to vector<256x128xbf16>
      %cst_51 = arith.constant dense<0.000000e+00> : vector<1x128xf32>
      %95 = tpu.matmul %92, %94, %cst_51 {dimension_numbers = #tpu.dot_dimension_numbers<[1], [0], [0], [1], [0, 0, 1, 1], [], []>} : vector<1x256xbf16>, vector<256x128xbf16>, vector<1x128xf32> -> vector<1x128xf32>
      %c0_52 = arith.constant 0 : index
      %c0_53 = arith.constant 0 : index
      %c0_54 = arith.constant 0 : index
      %96 = vector.load %arg12[%c0_52, %c0_53, %c0_54] : memref<2x1x128xf32, #tpu.memory_space<vmem>>, vector<1x1x128xf32>
      %97 = vector.shape_cast %96 : vector<1x1x128xf32> to vector<1x128xf32>
      %98 = arith.addf %95, %97 : vector<1x128xf32>
      %c0_55 = arith.constant 0 : index
      %c0_56 = arith.constant 0 : index
      %c0_57 = arith.constant 0 : index
      %99 = vector.load %arg13[%c0_55, %c0_56, %c0_57] : memref<2x1x128xf32, #tpu.memory_space<vmem>>, vector<1x1x128xf32>
      %100 = vector.shape_cast %99 : vector<1x1x128xf32> to vector<1x128xf32>
      %c0_58 = arith.constant 0 : index
      %c0_59 = arith.constant 0 : index
      %c0_60 = arith.constant 0 : index
      %101 = vector.load %arg14[%c0_58, %c0_59, %c0_60] : memref<2x1x128xf32, #tpu.memory_space<vmem>>, vector<1x1x128xf32>
      %102 = vector.shape_cast %101 : vector<1x1x128xf32> to vector<1x128xf32>
      %cst_61 = arith.constant dense<0.000000e+00> : vector<1xf32>
      %103 = vector.multi_reduction <add>, %98, %cst_61 [1] : vector<1x128xf32> to vector<1xf32>
      %104 = vector.shape_cast %103 : vector<1xf32> to vector<1x1xf32>
      %105 = arith.mulf %98, %98 : vector<1x128xf32>
      %cst_62 = arith.constant dense<0.000000e+00> : vector<1xf32>
      %106 = vector.multi_reduction <add>, %105, %cst_62 [1] : vector<1x128xf32> to vector<1xf32>
      %107 = vector.shape_cast %106 : vector<1xf32> to vector<1x1xf32>
      %cst_63 = arith.constant 7.812500e-03 : f32
      %108 = vector.broadcast %cst_63 : f32 to vector<1x1xf32>
      %109 = arith.mulf %104, %108 : vector<1x1xf32>
      %cst_64 = arith.constant 7.812500e-03 : f32
      %110 = vector.broadcast %cst_64 : f32 to vector<1x1xf32>
      %111 = arith.mulf %107, %110 : vector<1x1xf32>
      %112 = arith.mulf %109, %109 : vector<1x1xf32>
      %113 = arith.subf %111, %112 : vector<1x1xf32>
      %cst_65 = arith.constant 0.000000e+00 : f32
      %114 = vector.broadcast %cst_65 : f32 to vector<1x1xf32>
      %115 = arith.maximumf %113, %114 : vector<1x1xf32>
      %116 = vector.broadcast %109 : vector<1x1xf32> to vector<1x128xf32>
      %117 = arith.subf %98, %116 : vector<1x128xf32>
      %cst_66 = arith.constant 9.99999974E-6 : f32
      %118 = vector.broadcast %cst_66 : f32 to vector<1x1xf32>
      %119 = arith.addf %115, %118 : vector<1x1xf32>
      %120 = math.rsqrt %119 : vector<1x1xf32>
      %121 = vector.broadcast %120 : vector<1x1xf32> to vector<1x128xf32>
      %122 = arith.mulf %117, %121 : vector<1x128xf32>
      %123 = arith.mulf %122, %100 : vector<1x128xf32>
      %124 = arith.addf %123, %102 : vector<1x128xf32>
      %125 = arith.addf %124, %82 : vector<1x128xf32>
      %c1 = arith.constant 1 : index
      %c0_67 = arith.constant 0 : index
      %c0_68 = arith.constant 0 : index
      %126 = vector.load %arg7[%c1, %c0_67, %c0_68] : memref<2x1x128xf32, #tpu.memory_space<vmem>>, vector<1x1x128xf32>
      %127 = vector.shape_cast %126 : vector<1x1x128xf32> to vector<1x128xf32>
      %c1_69 = arith.constant 1 : index
      %c0_70 = arith.constant 0 : index
      %c0_71 = arith.constant 0 : index
      %128 = vector.load %arg8[%c1_69, %c0_70, %c0_71] : memref<2x1x128xf32, #tpu.memory_space<vmem>>, vector<1x1x128xf32>
      %129 = vector.shape_cast %128 : vector<1x1x128xf32> to vector<1x128xf32>
      %cst_72 = arith.constant dense<0.000000e+00> : vector<1xf32>
      %130 = vector.multi_reduction <add>, %125, %cst_72 [1] : vector<1x128xf32> to vector<1xf32>
      %131 = vector.shape_cast %130 : vector<1xf32> to vector<1x1xf32>
      %132 = arith.mulf %125, %125 : vector<1x128xf32>
      %cst_73 = arith.constant dense<0.000000e+00> : vector<1xf32>
      %133 = vector.multi_reduction <add>, %132, %cst_73 [1] : vector<1x128xf32> to vector<1xf32>
      %134 = vector.shape_cast %133 : vector<1xf32> to vector<1x1xf32>
      %cst_74 = arith.constant 7.812500e-03 : f32
      %135 = vector.broadcast %cst_74 : f32 to vector<1x1xf32>
      %136 = arith.mulf %131, %135 : vector<1x1xf32>
      %cst_75 = arith.constant 7.812500e-03 : f32
      %137 = vector.broadcast %cst_75 : f32 to vector<1x1xf32>
      %138 = arith.mulf %134, %137 : vector<1x1xf32>
      %139 = arith.mulf %136, %136 : vector<1x1xf32>
      %140 = arith.subf %138, %139 : vector<1x1xf32>
      %cst_76 = arith.constant 0.000000e+00 : f32
      %141 = vector.broadcast %cst_76 : f32 to vector<1x1xf32>
      %142 = arith.maximumf %140, %141 : vector<1x1xf32>
      %143 = vector.broadcast %136 : vector<1x1xf32> to vector<1x128xf32>
      %144 = arith.subf %125, %143 : vector<1x128xf32>
      %cst_77 = arith.constant 9.99999974E-6 : f32
      %145 = vector.broadcast %cst_77 : f32 to vector<1x1xf32>
      %146 = arith.addf %142, %145 : vector<1x1xf32>
      %147 = math.rsqrt %146 : vector<1x1xf32>
      %148 = vector.broadcast %147 : vector<1x1xf32> to vector<1x128xf32>
      %149 = arith.mulf %144, %148 : vector<1x128xf32>
      %150 = arith.mulf %149, %127 : vector<1x128xf32>
      %151 = arith.addf %150, %129 : vector<1x128xf32>
      %152 = arith.truncf %151 : vector<1x128xf32> to vector<1x128xbf16>
      %c1_78 = arith.constant 1 : index
      %c0_79 = arith.constant 0 : index
      %c0_80 = arith.constant 0 : index
      %153 = vector.load %arg9[%c1_78, %c0_79, %c0_80] : memref<2x128x256xbf16, #tpu.memory_space<vmem>>, vector<1x128x256xbf16>
      %154 = vector.shape_cast %153 : vector<1x128x256xbf16> to vector<128x256xbf16>
      %cst_81 = arith.constant dense<0.000000e+00> : vector<1x256xf32>
      %155 = tpu.matmul %152, %154, %cst_81 {dimension_numbers = #tpu.dot_dimension_numbers<[1], [0], [0], [1], [0, 0, 1, 1], [], []>} : vector<1x128xbf16>, vector<128x256xbf16>, vector<1x256xf32> -> vector<1x256xf32>
      %c1_82 = arith.constant 1 : index
      %c0_83 = arith.constant 0 : index
      %c0_84 = arith.constant 0 : index
      %156 = vector.load %arg10[%c1_82, %c0_83, %c0_84] : memref<2x1x256xf32, #tpu.memory_space<vmem>>, vector<1x1x256xf32>
      %157 = vector.shape_cast %156 : vector<1x1x256xf32> to vector<1x256xf32>
      %158 = arith.addf %155, %157 : vector<1x256xf32>
      %cst_85 = arith.constant 0.000000e+00 : f32
      %159 = vector.broadcast %cst_85 : f32 to vector<1x256xf32>
      %160 = arith.maximumf %158, %159 : vector<1x256xf32>
      %161 = arith.truncf %160 : vector<1x256xf32> to vector<1x256xbf16>
      %c1_86 = arith.constant 1 : index
      %c0_87 = arith.constant 0 : index
      %c0_88 = arith.constant 0 : index
      %162 = vector.load %arg11[%c1_86, %c0_87, %c0_88] : memref<2x256x128xbf16, #tpu.memory_space<vmem>>, vector<1x256x128xbf16>
      %163 = vector.shape_cast %162 : vector<1x256x128xbf16> to vector<256x128xbf16>
      %cst_89 = arith.constant dense<0.000000e+00> : vector<1x128xf32>
      %164 = tpu.matmul %161, %163, %cst_89 {dimension_numbers = #tpu.dot_dimension_numbers<[1], [0], [0], [1], [0, 0, 1, 1], [], []>} : vector<1x256xbf16>, vector<256x128xbf16>, vector<1x128xf32> -> vector<1x128xf32>
      %c1_90 = arith.constant 1 : index
      %c0_91 = arith.constant 0 : index
      %c0_92 = arith.constant 0 : index
      %165 = vector.load %arg12[%c1_90, %c0_91, %c0_92] : memref<2x1x128xf32, #tpu.memory_space<vmem>>, vector<1x1x128xf32>
      %166 = vector.shape_cast %165 : vector<1x1x128xf32> to vector<1x128xf32>
      %167 = arith.addf %164, %166 : vector<1x128xf32>
      %c1_93 = arith.constant 1 : index
      %c0_94 = arith.constant 0 : index
      %c0_95 = arith.constant 0 : index
      %168 = vector.load %arg13[%c1_93, %c0_94, %c0_95] : memref<2x1x128xf32, #tpu.memory_space<vmem>>, vector<1x1x128xf32>
      %169 = vector.shape_cast %168 : vector<1x1x128xf32> to vector<1x128xf32>
      %c1_96 = arith.constant 1 : index
      %c0_97 = arith.constant 0 : index
      %c0_98 = arith.constant 0 : index
      %170 = vector.load %arg14[%c1_96, %c0_97, %c0_98] : memref<2x1x128xf32, #tpu.memory_space<vmem>>, vector<1x1x128xf32>
      %171 = vector.shape_cast %170 : vector<1x1x128xf32> to vector<1x128xf32>
      %cst_99 = arith.constant dense<0.000000e+00> : vector<1xf32>
      %172 = vector.multi_reduction <add>, %167, %cst_99 [1] : vector<1x128xf32> to vector<1xf32>
      %173 = vector.shape_cast %172 : vector<1xf32> to vector<1x1xf32>
      %174 = arith.mulf %167, %167 : vector<1x128xf32>
      %cst_100 = arith.constant dense<0.000000e+00> : vector<1xf32>
      %175 = vector.multi_reduction <add>, %174, %cst_100 [1] : vector<1x128xf32> to vector<1xf32>
      %176 = vector.shape_cast %175 : vector<1xf32> to vector<1x1xf32>
      %cst_101 = arith.constant 7.812500e-03 : f32
      %177 = vector.broadcast %cst_101 : f32 to vector<1x1xf32>
      %178 = arith.mulf %173, %177 : vector<1x1xf32>
      %cst_102 = arith.constant 7.812500e-03 : f32
      %179 = vector.broadcast %cst_102 : f32 to vector<1x1xf32>
      %180 = arith.mulf %176, %179 : vector<1x1xf32>
      %181 = arith.mulf %178, %178 : vector<1x1xf32>
      %182 = arith.subf %180, %181 : vector<1x1xf32>
      %cst_103 = arith.constant 0.000000e+00 : f32
      %183 = vector.broadcast %cst_103 : f32 to vector<1x1xf32>
      %184 = arith.maximumf %182, %183 : vector<1x1xf32>
      %185 = vector.broadcast %178 : vector<1x1xf32> to vector<1x128xf32>
      %186 = arith.subf %167, %185 : vector<1x128xf32>
      %cst_104 = arith.constant 9.99999974E-6 : f32
      %187 = vector.broadcast %cst_104 : f32 to vector<1x1xf32>
      %188 = arith.addf %184, %187 : vector<1x1xf32>
      %189 = math.rsqrt %188 : vector<1x1xf32>
      %190 = vector.broadcast %189 : vector<1x1xf32> to vector<1x128xf32>
      %191 = arith.mulf %186, %190 : vector<1x128xf32>
      %192 = arith.mulf %191, %169 : vector<1x128xf32>
      %193 = arith.addf %192, %171 : vector<1x128xf32>
      %194 = arith.addf %193, %151 : vector<1x128xf32>
      %195 = arith.truncf %194 : vector<1x128xf32> to vector<1x128xbf16>
      %c0_105 = arith.constant 0 : index
      %c0_106 = arith.constant 0 : index
      %196 = vector.load %arg15[%c0_105, %c0_106] : memref<128x128xbf16, #tpu.memory_space<vmem>>, vector<128x128xbf16>
      %cst_107 = arith.constant dense<0.000000e+00> : vector<1x128xf32>
      %197 = tpu.matmul %195, %196, %cst_107 {dimension_numbers = #tpu.dot_dimension_numbers<[1], [0], [0], [1], [0, 0, 1, 1], [], []>} : vector<1x128xbf16>, vector<128x128xbf16>, vector<1x128xf32> -> vector<1x128xf32>
      %c0_108 = arith.constant 0 : index
      %c0_109 = arith.constant 0 : index
      %198 = vector.load %arg16[%c0_108, %c0_109] : memref<1x128xf32, #tpu.memory_space<vmem>>, vector<1x128xf32>
      %199 = arith.addf %197, %198 : vector<1x128xf32>
      %c0_110 = arith.constant 0 : index
      %c0_111 = arith.constant 0 : index
      %c0_112 = arith.constant 0 : index
      %200 = vector.load %arg17[%c0_110, %c0_111, %c0_112] : memref<1x1x128xf32, #tpu.memory_space<vmem>>, vector<1x1x128xf32>
      %201 = vector.shape_cast %200 : vector<1x1x128xf32> to vector<1x128xf32>
      %202 = vector.shape_cast %199 : vector<1x128xf32> to vector<1x1x128xf32>
      tpu.vector_store %arg17[%c0_110, %c0_111, %c0_112], %202 {strides = array<i32>} : memref<1x1x128xf32, #tpu.memory_space<vmem>>, vector<1x1x128xf32>,
    } else {
    }
    return
  }
  func.func @transform_0(%arg0: i32, %arg1: i32) -> (i32, i32, i32) {
    %c0_i32 = arith.constant 0 : i32
    %c0_i32_0 = arith.constant 0 : i32
    return %arg0, %arg1, %c0_i32 : i32, i32, i32
  }
  func.func @transform_1(%arg0: i32, %arg1: i32) -> (i32, i32) {
    %c0_i32 = arith.constant 0 : i32
    %c0_i32_0 = arith.constant 0 : i32
    %c0_i32_1 = arith.constant 0 : i32
    return %c0_i32, %c0_i32_0 : i32, i32
  }
  func.func @transform_2(%arg0: i32, %arg1: i32) -> (i32, i32) {
    %c0_i32 = arith.constant 0 : i32
    %c0_i32_0 = arith.constant 0 : i32
    %c0_i32_1 = arith.constant 0 : i32
    return %c0_i32, %c0_i32_0 : i32, i32
  }
  func.func @transform_3(%arg0: i32, %arg1: i32) -> (i32, i32) {
    %c0_i32 = arith.constant 0 : i32
    %c0_i32_0 = arith.constant 0 : i32
    %c0_i32_1 = arith.constant 0 : i32
    return %c0_i32, %c0_i32_0 : i32, i32
  }
  func.func @transform_4(%arg0: i32, %arg1: i32) -> (i32, i32) {
    %c0_i32 = arith.constant 0 : i32
    %c0_i32_0 = arith.constant 0 : i32
    %c0_i32_1 = arith.constant 0 : i32
    return %c0_i32, %c0_i32_0 : i32, i32
  }
  func.func @transform_5(%arg0: i32, %arg1: i32) -> (i32, i32, i32) {
    %c0_i32 = arith.constant 0 : i32
    %c0_i32_0 = arith.constant 0 : i32
    %c0_i32_1 = arith.constant 0 : i32
    %c0_i32_2 = arith.constant 0 : i32
    return %c0_i32, %c0_i32_0, %c0_i32_1 : i32, i32, i32
  }
  func.func @transform_6(%arg0: i32, %arg1: i32) -> (i32, i32, i32) {
    %c0_i32 = arith.constant 0 : i32
    %c0_i32_0 = arith.constant 0 : i32
    %c0_i32_1 = arith.constant 0 : i32
    %c0_i32_2 = arith.constant 0 : i32
    return %c0_i32, %c0_i32_0, %c0_i32_1 : i32, i32, i32
  }
  func.func @transform_7(%arg0: i32, %arg1: i32) -> (i32, i32, i32) {
    %c0_i32 = arith.constant 0 : i32
    %c0_i32_0 = arith.constant 0 : i32
    %c0_i32_1 = arith.constant 0 : i32
    %c0_i32_2 = arith.constant 0 : i32
    return %c0_i32, %c0_i32_0, %c0_i32_1 : i32, i32, i32
  }
  func.func @transform_8(%arg0: i32, %arg1: i32) -> (i32, i32, i32) {
    %c0_i32 = arith.constant 0 : i32
    %c0_i32_0 = arith.constant 0 : i32
    %c0_i32_1 = arith.constant 0 : i32
    %c0_i32_2 = arith.constant 0 : i32
    return %c0_i32, %c0_i32_0, %c0_i32_1 : i32, i32, i32
  }
  func.func @transform_9(%arg0: i32, %arg1: i32) -> (i32, i32, i32) {
    %c0_i32 = arith.constant 0 : i32
    %c0_i32_0 = arith.constant 0 : i32
    %c0_i32_1 = arith.constant 0 : i32
    %c0_i32_2 = arith.constant 0 : i32
    return %c0_i32, %c0_i32_0, %c0_i32_1 : i32, i32, i32
  }
  func.func @transform_10(%arg0: i32, %arg1: i32) -> (i32, i32, i32) {
    %c0_i32 = arith.constant 0 : i32
    %c0_i32_0 = arith.constant 0 : i32
    %c0_i32_1 = arith.constant 0 : i32
    %c0_i32_2 = arith.constant 0 : i32
    return %c0_i32, %c0_i32_0, %c0_i32_1 : i32, i32, i32
  }
  func.func @transform_11(%arg0: i32, %arg1: i32) -> (i32, i32, i32) {
    %c0_i32 = arith.constant 0 : i32
    %c0_i32_0 = arith.constant 0 : i32
    %c0_i32_1 = arith.constant 0 : i32
    %c0_i32_2 = arith.constant 0 : i32
    return %c0_i32, %c0_i32_0, %c0_i32_1 : i32, i32, i32
  }
  func.func @transform_12(%arg0: i32, %arg1: i32) -> (i32, i32, i32) {
    %c0_i32 = arith.constant 0 : i32
    %c0_i32_0 = arith.constant 0 : i32
    %c0_i32_1 = arith.constant 0 : i32
    %c0_i32_2 = arith.constant 0 : i32
    return %c0_i32, %c0_i32_0, %c0_i32_1 : i32, i32, i32
  }
  func.func @transform_13(%arg0: i32, %arg1: i32) -> (i32, i32) {
    %c0_i32 = arith.constant 0 : i32
    %c0_i32_0 = arith.constant 0 : i32
    %c0_i32_1 = arith.constant 0 : i32
    return %c0_i32, %c0_i32_0 : i32, i32
  }
  func.func @transform_14(%arg0: i32, %arg1: i32) -> (i32, i32) {
    %c0_i32 = arith.constant 0 : i32
    %c0_i32_0 = arith.constant 0 : i32
    %c0_i32_1 = arith.constant 0 : i32
    return %c0_i32, %c0_i32_0 : i32, i32
  }
  func.func @transform_15(%arg0: i32, %arg1: i32) -> (i32, i32, i32) {
    %c0_i32 = arith.constant 0 : i32
    %c0_i32_0 = arith.constant 0 : i32
    %c0_i32_1 = arith.constant 0 : i32
    return %arg0, %c0_i32, %c0_i32_0 : i32, i32, i32
  }
}

</mosaic_0001>

<bundles_post_ra>
// kernel: tpu_custom_call.1
= control target key start
LH: loop header
LB: loop body
LE: loop exit
PB: predicated region body
PF: predicated region fallthrough
CT: control target
= control target key end

     0   :  { %s3736_s0 = inlined_call_operand.hbm [shape: bf16[2,24,768], index: 0, kind: input, shape index: {}]   ;;  %s3737_s1 = inlined_call_operand.hbm [shape: bf16[768,128], index: 1, kind: input, shape index: {}]   ;;  %s3738_s2 = inlined_call_operand.vmem [shape: f32[1,128], index: 2, kind: input, shape index: {}]   ;;  %s3739_s3 = inlined_call_operand.hbm [shape: f32[1,128], index: 3, kind: input, shape index: {}]   ;;  %s3740_s4 = inlined_call_operand.hbm [shape: f32[1,128], index: 4, kind: input, shape index: {}]   ;;  %s3741_s5 = inlined_call_operand.vmem [shape: f32[2,1,128], index: 5, kind: input, shape index: {}]   ;;  %s3742_s6 = inlined_call_operand.vmem [shape: f32[2,1,128], index: 6, kind: input, shape index: {}]   ;;  %s3743_s7 = inlined_call_operand.hbm [shape: bf16[2,128,256], index: 7, kind: input, shape index: {}]   ;;  %s3744_s8 = inlined_call_operand.vmem [shape: f32[2,1,256], index: 8, kind: input, shape index: {}]   ;;  %s3745_s9 = inlined_call_operand.hbm [shape: bf16[2,256,128], index: 9, kind: input, shape index: {}]   ;;  %s3746_s10 = inlined_call_operand.vmem [shape: f32[2,1,128], index: 10, kind: input, shape index: {}]   ;;  %s3747_s11 = inlined_call_operand.vmem [shape: f32[2,1,128], index: 11, kind: input, shape index: {}]   ;;  %s3748_s12 = inlined_call_operand.vmem [shape: f32[2,1,128], index: 12, kind: input, shape index: {}]   ;;  %s3749_s13 = inlined_call_operand.hbm [shape: bf16[128,128], index: 13, kind: input, shape index: {}]   ;;  %s3750_s14 = inlined_call_operand.vmem [shape: f32[1,128], index: 14, kind: input, shape index: {}]   ;;  %s3751_s15 = inlined_call_operand.hbm [shape: f32[2,1,128], index: 15, kind: output, shape index: {}]  }
   0x1   :  { %3773 = sst [smem:[#allocation25_spill]] %s3736_s0 }
   0x2   :  { %3774 = sst [smem:[#allocation26_spill]] %s3737_s1 }
   0x3   :  { %3775 = sst [smem:[#allocation27_spill]] %s3738_s2 }
   0x4   :  { %3776 = sst [smem:[#allocation28_spill]] %s3739_s3 }
   0x5   :  { %3777 = sst [smem:[#allocation29_spill]] %s3740_s4 }
   0x6   :  { %3778 = sst [smem:[#allocation30_spill]] %s3741_s5 }
   0x7   :  { %3779 = sst [smem:[#allocation31_spill]] %s3742_s6 }
   0x8   :  { %3780 = sst [smem:[#allocation32_spill]] %s3743_s7 }
   0x9   :  { %3781 = sst [smem:[#allocation33_spill]] %s3744_s8 }
   0xa   :  { %3782 = sst [smem:[#allocation34_spill]] %s3745_s9 }
   0xb   :  { %3783 = sst [smem:[#allocation35_spill]] %s3746_s10 }
   0xc   :  { %3784 = sst [smem:[#allocation36_spill]] %s3747_s11 }
   0xd   :  { %3785 = sst [smem:[#allocation37_spill]] %s3748_s12 }
   0xe   :  { %3786 = sst [smem:[#allocation38_spill]] %s3750_s14 }
   0xf   :  { %3787 = sst [smem:[#allocation39_spill]] %s3751_s15 }
  0x10   :  { %20 = vsyncpa [#allocation4], 0 }
  0x11   :  { %22 = vsyncpa [#allocation4 + $0x1], 0 }
  0x12   :  { %23 = vsyncpa [#allocation7], 0 }
  0x13   :  { %24 = vsyncpa [#allocation10], 0 }
  0x14   :  { %25 = vsyncpa [#allocation13], 0 }
  0x15   :  { %26 = vsyncpa [#allocation5], 0 }
  0x16   :  { %28 = vsyncpa [#allocation5 + $0x1], 0  ;;  %s3252_s18 = smov 0   ;;  %s3254_s19 = smov 0  }
  0x17   :  { %s3256_s20 = smov 0   ;;  %s3258_s21 = smov 0  }
  0x18   :  { %s3260_s22 = smov 0   ;;  %s3262_s23 = smov 0  }
  0x19   :  { %s3264_s24 = smov 0   ;;  %s3266_s25 = smov 0  }
  0x1a   :  { %s3268_s26 = smov 0   ;;  %s3270_s27 = smov 0  }
  0x1b   :  { %s3272_s28 = smov 0  }
  0x1c LB: > { %3788 = sst [smem:[#allocation21_spill]] %s3114_s18  ;;  %s3753_s29 = sadd.s32 4294967295, %s3154_s28   ;;  %s3154_s28 = sphi %s3272_s28, %s34_s28   ;;  %s3150_s27 = sphi %s3270_s27, %s3842_s27   ;;  %s3146_s26 = sphi %s3268_s26, %s3841_s26   ;;  %s3142_s25 = sphi %s3266_s25, %s3840_s25   ;;  %s3138_s24 = sphi %s3264_s24, %s3839_s24   ;;  %s3134_s23 = sphi %s3262_s23, %s3838_s23   ;;  %s3130_s22 = sphi %s3260_s22, %s3837_s22   ;;  %s3126_s21 = sphi %s3258_s21, %s3836_s21   ;;  %s3122_s20 = sphi %s3256_s20, %s3835_s20   ;;  %s3118_s19 = sphi %s3254_s19, %s3834_s19   ;;  %s3114_s18 = sphi %s3252_s18, %s3833_s18  }
  0x1d   : > { %3789 = sst [smem:[#allocation22_spill]] %s3138_s24  ;;  %p2199_p0 = scmp.ge.s32.totalorder %s3154_s28, 1 }
  0x1e   : > { %3790 = sst [smem:[#allocation23_spill]] %s3142_s25  ;;  %p3311_p1 = scmp.eq.s32.totalorder %s3753_s29, 0 }
  0x1f   : > { %p399_p2 = scmp.lt.s32.totalorder %s3154_s28, 7  ;;  %s3156_s17 = smov [#allocation6]  }
  0x20   : > { %s3791_s30 = scalar_select %p3311_p1, 1, 0 }
  0x21   : > { %p3316_p3 = pnand %p2199_p0, %p399_p2  ;;  %s411_s15 = sshll.u32 %s3156_s17, 4  ;;  %s3320_s15 = int_to_ptr.vmem [resolvable:$true] %s411_s15 }
  0x22   : > { %s3157_s29 = smov [#allocation9]   ;;  %s3158_s12 = smov [#allocation12]  }
  0x23   : > { %s3792_s16 = scalar_select %p3316_p3, 1, 0 }
  0x24   : > { %p2527_p4 = pneg %p3316_p3  ;;  %s439_s14 = sshll.u32 %s3157_s29, 4  ;;  %s3330_s14 = int_to_ptr.vmem [resolvable:$true] %s439_s14 }
  0x25   : > { %3793 = sst [smem:[#allocation24_spill]] %s3792_s16  ;;  %s3332_s11 = sshll.u32 %s3158_s12, 4  ;;  %s472_s11 = int_to_ptr.vmem [resolvable:$true] %s3332_s11 }
  0x26   : > { %p3326_p5 = pnand %p2527_p4, %p3311_p1  ;;  %s3795_s1 = sld [smem:[#allocation26_spill]] }
  0x28   : > { %p3342_p7 = pneg %p3326_p5 }
  0x2c   : > { %s2822_s17 = scalar_lea.hbm %s3795_s1, 6144 }
  0x2d   : > { %p2823_p6 = scmp.ne.s32.totalorder %s3795_s1, %s2822_s17  ;;  %p2829_p10 = scmp.lt.u32.totalorder %s2822_s17, %s3795_s1 }
  0x2f   : > { %p2825_p8 = pnand %p3342_p7, %p2823_p6 }
  0x31   : > { %p2826_p9 = pneg %p2825_p8 }
  0x33   : > { %p2831_p11 = pnand %p2829_p10, %p2826_p9 }
  0x35   : > { %2834 = shalt.err (!%p2831_p11)
}
  0x36   : > { %s2835_s5 = scalar_lea.vmem %s3320_s15, 6144  ;;  %p2843_p2 = scmp.lt.s32.totalorder %s3320_s15, %s3320_s15 }
  0x37   : > { %p2836_p12 = scmp.ne.s32.totalorder %s3320_s15, %s2835_s5  ;;  %p2844_p4 = scmp.lt.s32.totalorder %s2835_s5, %s2835_s5 }
  0x39   : > { %p2838_p13 = pnand %p2836_p12, %p3342_p7  ;;  %p2845_p6 = por %p2844_p4, %p2843_p2 }
  0x3b   : > { %p2839_p0 = pneg %p2838_p13 }
  0x3d   : > { %p2846_p8 = pnand %p2845_p6, %p2839_p0 }
  0x3f   : > { %2849 = shalt.err (!%p2846_p8)
}
  0x40   : > { %s3766_s6 = smov 64   ;;  %s3160_s8 = smov 4  }
  0x41   : > { %2530 = dma.hbm_to_vmem [thread:$0]  (!%p3326_p5), %s3795_s1, 6144, %s3320_s15, [#allocation7], %s3766_s6, %s3766_s6, %s3160_s8  }
  0x42   : > { %s3797_s4 = sld [smem:[#allocation29_spill]] }
  0x48   : > { %s2850_s5 = scalar_lea.hbm %s3797_s4, 16 }
  0x49   : > { %p2851_p9 = scmp.ne.s32.totalorder %s3797_s4, %s2850_s5  ;;  %p2857_p12 = scmp.lt.u32.totalorder %s2850_s5, %s3797_s4 }
  0x4b   : > { %p2853_p10 = pnand %p2851_p9, %p3342_p7 }
  0x4d   : > { %p2854_p11 = pneg %p2853_p10 }
  0x4f   : > { %p2859_p13 = pnand %p2857_p12, %p2854_p11 }
  0x51   : > { %2862 = shalt.err (!%p2859_p13)
}
  0x52   : > { %s2863_s15 = scalar_lea.vmem %s3330_s14, 16  ;;  %s2870_s24 = scalar_lea.vmem %s3330_s14, 32 }
  0x53   : > { %p2864_p0 = scmp.ne.s32.totalorder %s3330_s14, %s2863_s15  ;;  %p2871_p6 = scmp.lt.s32.totalorder %s3330_s14, %s3330_s14 }
  0x54   : > { %p2872_p8 = scmp.lt.s32.totalorder %s2870_s24, %s2863_s15 }
  0x55   : > { %p2866_p2 = pnand %p2864_p0, %p3342_p7 }
  0x56   : > { %p2873_p9 = por %p2872_p8, %p2871_p6 }
  0x57   : > { %p2867_p4 = pneg %p2866_p2 }
  0x59   : > { %p2874_p10 = pnand %p2873_p9, %p2867_p4 }
  0x5b   : > { %2877 = shalt.err (!%p2874_p10)
}
  0x5c   : > { %2536 = dma.hbm_to_vmem [thread:$0]  (!%p3326_p5), %s3797_s4, 16, %s3330_s14, [#allocation10]  }
  0x5d   : > { %s3798_s9 = sld [smem:[#allocation34_spill]] }
  0x63   : > { %s2878_s17 = scalar_lea.hbm %s3798_s9, 4096 }
  0x64   : > { %p2879_p11 = scmp.ne.s32.totalorder %s3798_s9, %s2878_s17  ;;  %p2885_p0 = scmp.lt.u32.totalorder %s2878_s17, %s3798_s9 }
  0x66   : > { %p2881_p12 = pnand %p2879_p11, %p3342_p7 }
  0x68   : > { %p2882_p13 = pneg %p2881_p12 }
  0x6a   : > { %p2887_p2 = pnand %p2885_p0, %p2882_p13 }
  0x6c   : > { %2890 = shalt.err (!%p2887_p2)
}
  0x6d   : > { %s2891_s24 = scalar_lea.vmem %s472_s11, 4096  ;;  %p2899_p9 = scmp.lt.s32.totalorder %s472_s11, %s472_s11 }
  0x6e   : > { %p2892_p4 = scmp.ne.s32.totalorder %s472_s11, %s2891_s24  ;;  %p2900_p10 = scmp.lt.s32.totalorder %s2891_s24, %s2891_s24 }
  0x70   : > { %p2894_p6 = pnand %p2892_p4, %p3342_p7  ;;  %p2901_p3 = por %p2900_p10, %p2899_p9 }
  0x72   : > { %p2895_p8 = pneg %p2894_p6 }
  0x74   : > { %p2902_p1 = pnand %p2901_p3, %p2895_p8 }
  0x76   : > { %2905 = shalt.err (!%p2902_p1)
}
  0x77   : > { %2542 = dma.hbm_to_vmem [thread:$0]  (!%p3326_p5), %s3798_s9, 4096, %s472_s11, [#allocation13], %s3766_s6, %s3766_s6, %s3160_s8  }
  0x78   : > { %s3161_s18 = smov [#allocation8]   ;;  %s3162_s10 = smov [#allocation11]  }
  0x79   : > { %s428_s16 = sshll.u32 %s3161_s18, 4  ;;  %s455_s17 = sshll.u32 %s3162_s10, 4  ;;  %s429_s16 = int_to_ptr.vmem [resolvable:$true] %s428_s16  ;;  %s456_s17 = int_to_ptr.vmem [resolvable:$true] %s455_s17 }
  0x7a   : > { %s3799_s3 = sld [smem:[#allocation28_spill]] }
  0x80   : > { %s2906_s5 = scalar_lea.hbm %s3799_s3, 16 }
  0x81   : > { %p2907_p1 = scmp.ne.s32.totalorder %s3799_s3, %s2906_s5  ;;  %p2913_p12 = scmp.lt.u32.totalorder %s2906_s5, %s3799_s3 }
  0x83   : > { %p2909_p3 = pnand %p2907_p1, %p3342_p7 }
  0x85   : > { %p2910_p11 = pneg %p2909_p3 }
  0x87   : > { %p2915_p13 = pnand %p2913_p12, %p2910_p11 }
  0x89   : > { %2918 = shalt.err (!%p2915_p13)
}
  0x8a   : > { %s2919_s11 = scalar_lea.vmem %s429_s16, 16  ;;  %s2926_s0 = scalar_lea.vmem %s429_s16, 32 }
  0x8b   : > { %p2920_p0 = scmp.ne.s32.totalorder %s429_s16, %s2919_s11  ;;  %p2927_p6 = scmp.lt.s32.totalorder %s429_s16, %s429_s16 }
  0x8c   : > { %p2928_p8 = scmp.lt.s32.totalorder %s2926_s0, %s2919_s11 }
  0x8d   : > { %p2922_p2 = pnand %p2920_p0, %p3342_p7 }
  0x8e   : > { %p2929_p9 = por %p2928_p8, %p2927_p6 }
  0x8f   : > { %p2923_p4 = pneg %p2922_p2 }
  0x91   : > { %p2930_p10 = pnand %p2929_p9, %p2923_p4 }
  0x93   : > { %2933 = shalt.err (!%p2930_p10)
}
  0x94   : > { %2533 = dma.hbm_to_vmem [thread:$0]  (!%p3326_p5), %s3799_s3, 16, %s429_s16, [#allocation7]  }
  0x95   : > { %s3800_s7 = sld [smem:[#allocation32_spill]] }
  0x9b   : > { %s2934_s12 = scalar_lea.hbm %s3800_s7, 4096 }
  0x9c   : > { %p2935_p1 = scmp.ne.s32.totalorder %s3800_s7, %s2934_s12  ;;  %p2941_p12 = scmp.lt.u32.totalorder %s2934_s12, %s3800_s7 }
  0x9e   : > { %p2937_p3 = pnand %p2935_p1, %p3342_p7 }
  0xa0   : > { %p2938_p11 = pneg %p2937_p3 }
  0xa2   : > { %p2943_p13 = pnand %p2941_p12, %p2938_p11 }
  0xa4   : > { %2946 = shalt.err (!%p2943_p13)
}
  0xa5   : > { %s2947_s11 = scalar_lea.vmem %s456_s17, 4096  ;;  %p2955_p6 = scmp.lt.s32.totalorder %s456_s17, %s456_s17 }
  0xa6   : > { %p2948_p0 = scmp.ne.s32.totalorder %s456_s17, %s2947_s11  ;;  %p2956_p8 = scmp.lt.s32.totalorder %s2947_s11, %s2947_s11 }
  0xa8   : > { %p2950_p2 = pnand %p2948_p0, %p3342_p7  ;;  %p2957_p9 = por %p2956_p8, %p2955_p6 }
  0xaa   : > { %p2951_p4 = pneg %p2950_p2 }
  0xac   : > { %p2958_p10 = pnand %p2957_p9, %p2951_p4 }
  0xae   : > { %2961 = shalt.err (!%p2958_p10)
}
  0xaf   : > { %s3163_s16 = smov 128   ;;  %s3164_s0 = smov 8  }
  0xb0   : > { %2539 = dma.hbm_to_vmem [thread:$0]  (!%p3326_p5), %s3800_s7, 4096, %s456_s17, [#allocation10], %s3163_s16, %s3163_s16, %s3164_s0  }
  0xb1   : > { %s3165_s1 = smov [#allocation14]   ;;  %s2962_s15 = scalar_lea.hbm %s3749_s13, 1024 }
  0xb2   : > { %s493_s29 = sshll.u32 %s3165_s1, 4  ;;  %p2963_p1 = scmp.ne.s32.totalorder %s3749_s13, %s2962_s15  ;;  %s494_s29 = int_to_ptr.vmem [resolvable:$true] %s493_s29 }
  0xb3   : > { %p2969_p12 = scmp.lt.u32.totalorder %s2962_s15, %s3749_s13 }
  0xb4   : > { %p2965_p3 = pnand %p2963_p1, %p3342_p7 }
  0xb6   : > { %p2966_p11 = pneg %p2965_p3 }
  0xb8   : > { %p2971_p13 = pnand %p2969_p12, %p2966_p11 }
  0xba   : > { %2974 = shalt.err (!%p2971_p13)
}
  0xbb   : > { %s2975_s17 = scalar_lea.vmem %s494_s29, 1024  ;;  %p2983_p6 = scmp.lt.s32.totalorder %s494_s29, %s494_s29 }
  0xbc   : > { %p2976_p0 = scmp.ne.s32.totalorder %s494_s29, %s2975_s17  ;;  %p2984_p8 = scmp.lt.s32.totalorder %s2975_s17, %s2975_s17 }
  0xbe   : > { %p2978_p2 = pnand %p2976_p0, %p3342_p7  ;;  %p2985_p9 = por %p2984_p8, %p2983_p6 }
  0xc0   : > { %p2979_p4 = pneg %p2978_p2 }
  0xc2   : > { %p2986_p10 = pnand %p2985_p9, %p2979_p4 }
  0xc4   : > { %2989 = shalt.err (!%p2986_p10)
}
  0xc5   : > { %s3801_s16 = smov 64   ;;  %s2198_s2 = sadd.s32 4294967294, %s3154_s28  }
  0xc6   : > { %2545 = dma.hbm_to_vmem [thread:$0]  (!%p3326_p5), %s3749_s13, 1024, %s494_s29, [#allocation13], %s3801_s16, %s3801_s16, %s3160_s8  }
  0xc7   : > { %s43_s25 = sadd.s32 1, %s3146_s26  ;;  %s46_s18 = sadd.s32 1, %s3150_s27 }
  0xc8   : > { %p44_p7 = scmp.ge.s32.totalorder %s43_s25, 3  ;;  %s55_s10 = sadd.s32 1, %s3134_s23 }
  0xc9   : > { %p62_p1 = scmp.ne.s32.totalorder %s3134_s23, %s3130_s22  ;;  %p63_p3 = scmp.eq.s32.totalorder %s3154_s28, 0 }
  0xca   : > { %s3844_s25 = smov (%p44_p7, %s43_s25), 0  ;;  %s3846_s18 = smov (!%p44_p7, %s46_s18), %s3150_s27 }
  0xcb   : > { %s51_s1 = ssub.s32 %s3146_s26, %s3844_s25  ;;  %s3802_s8 = sld [smem:[#allocation21_spill]] }
  0xcc   : > { %p48_p5 = scmp.ge.s32.totalorder %s3846_s18, 2  ;;  %p68_p11 = scmp.ne.s32.totalorder %s3130_s22, %s3126_s21 }
  0xcd   : > { %p3483_p12 = por %p63_p3, %p62_p1  ;;  %s375_s12 = sadd.s32 1, %s3122_s20 }
  0xce   : > { %s3848_s18 = smov (%p48_p5, %s3846_s18), 0  ;;  %p3804_p13 = scmp.ne.s32.totalorder %s3791_s30, 0 }
  0xcf   : > { %p385_p2 = scmp.ne.s32.totalorder %s3122_s20, %s3118_s19  ;;  %s50_s15 = ssub.s32 %s3150_s27, %s3848_s18 }
  0xd0   : > { %p3492_p0 = por %p3804_p13, %p68_p11  ;;  %s3806_s21 = sadd.s32 4294967295, %s3154_s28  }
  0xd1   : > { %p386_p4 = scmp.eq.s32.totalorder %s3806_s21, 5  ;;  %s52_s24 = sor.u32 %s51_s1, %s50_s15 }
  0xd2   : > { %p373_p6 = scmp.eq.s32.totalorder %s50_s15, 0  ;;  %p53_p8 = scmp.eq.s32.totalorder %s52_s24, 0 }
  0xd3   : > { %p3502_p9 = por %p386_p4, %p385_p2  ;;  %p391_p10 = scmp.ne.s32.totalorder %s3118_s19, %s3802_s8 }
  0xd4   : > { %s3507_s11 = scalar_select %p373_p6, %s3122_s20, %s375_s12  }
  0xd5   : > { %s3807_s14 = scalar_select %p3502_p9, 1, 0 }
  0xd6   : > { %s3510_s17 = scalar_select %p53_p8, %s3134_s23, %s55_s10  }
  0xd7   : > { %p392_p7 = scmp.eq.s32.totalorder %s2198_s2, 5  ;;  %p2560_p1 = scmp.lt.s32.totalorder %s3154_s28, 6 }
  0xd8   : > { %s510_s16 = sand.u32 1, %s3134_s23   ;;  %s2496_s12 = smul.u32 6, %s3146_s26 }
  0xd9   : > { %p3516_p3 = por %p392_p7, %p391_p10  ;;  %s2495_s0 = smul.u32 24, %s510_s16 }
  0xda   : > { %p3522_p5 = pnand %p2560_p1, %p3483_p12  ;;  %s2497_s15 = smul.u32 18, %s3150_s27 }
  0xdb   : > { %s3808_s6 = scalar_select %p3516_p3, 1, 0 }
  0xdc   : > { %s514_s10 = scalar_lea.vmem [#allocation3], %s2495_s0  ;;  %s520_s8 = sadd.s32 %s2497_s15, %s2496_s12 }
  0xdd   : > { %s524_s21 = sshll.u32 %s514_s10, 4  ;;  %s2207_s2 = sshll.u32 %s520_s8, 6  ;;  %s3528_s21 = int_to_ptr.vmem [resolvable:$true] %s524_s21 }
  0xde   : > { %s3810_s4 = sld [smem:[#allocation25_spill]]  ;;  %s511_s29 = scalar_lea.sflag [#allocation4], %s510_s16 }
  0xdf   : > { %p2992_p12 = pneg %p3522_p5 }
  0xe4   : > { %s3533_s7 = scalar_lea.hbm %s3810_s4, %s2207_s2  ;;  %s2995_s15 = scalar_lea.hbm %s3810_s4, 2304 }
  0xe5   : > { %s2990_s9 = scalar_lea.hbm %s3533_s7, 384  ;;  %p2996_p4 = scmp.lt.u32.totalorder %s3533_s7, %s3810_s4 }
  0xe6   : > { %p2991_p11 = scmp.ne.s32.totalorder %s3533_s7, %s2990_s9  ;;  %p2997_p6 = scmp.lt.u32.totalorder %s2995_s15, %s2990_s9 }
  0xe7   : > { %p2999_p10 = scmp.lt.u32.totalorder %s2990_s9, %s3533_s7 }
  0xe8   : > { %p2993_p13 = pnand %p2992_p12, %p2991_p11  ;;  %p2998_p8 = por %p2997_p6, %p2996_p4 }
  0xea   : > { %p2994_p2 = pneg %p2993_p13  ;;  %p3000_p7 = por %p2999_p10, %p2998_p8 }
  0xec   : > { %p3001_p1 = pnand %p3000_p7, %p2994_p2 }
  0xee   : > { %3004 = shalt.err (!%p3001_p1)
}
  0xef   : > { %s3005_s16 = scalar_lea.vmem %s3528_s21, 384  ;;  %s3166_s8 = smov [#allocation3]  }
  0xf0   : > { %p3006_p11 = scmp.ne.s32.totalorder %s3528_s21, %s3005_s16  ;;  %s3010_s2 = sshll.u32 %s3166_s8, 4  ;;  %s3011_s2 = int_to_ptr.vmem [resolvable:$false] %s3010_s2 }
  0xf1   : > { %s3012_s24 = scalar_lea.vmem %s3011_s2, 768  ;;  %p3013_p9 = scmp.lt.s32.totalorder %s3528_s21, %s3011_s2 }
  0xf2   : > { %p3008_p13 = pnand %p3006_p11, %p2992_p12  ;;  %p3014_p4 = scmp.lt.s32.totalorder %s3012_s24, %s3005_s16 }
  0xf4   : > { %p3009_p3 = pneg %p3008_p13  ;;  %p3015_p6 = por %p3014_p4, %p3013_p9 }
  0xf6   : > { %p3016_p8 = pnand %p3015_p6, %p3009_p3 }
  0xf8   : > { %3019 = shalt.err (!%p3016_p8)
}
  0xf9   : > { %2549 = dma.hbm_to_vmem [thread:$0]  (!%p3522_p5), %s3533_s7, 384, %s3528_s21, %s511_s29  }
  0xfa   : > { %s3811_s9 = sld [smem:[#allocation24_spill]] }
 0x100   : > { %p3812_p2 = scmp.ne.s32.totalorder %s3811_s9, 0 }
 0x101   : > { %s535_s0 = sand.u32 (!%p3812_p2), 1, %s3130_s22  }
 0x102   : > { %533 = sbr.rel (%p3812_p2) target bundleno = 2578 (0xa12), region = 80  ;;  %s536_s15 = scalar_lea.sflag (!%p3812_p2), [#allocation4], %s535_s0 }
 0x103   : > { %s2498_s12 = smul.u32 (!%p3812_p2), 24, %s535_s0 }
 0x105   : > { %s3563_s3 = scalar_lea.vmem (!%p3812_p2), [#allocation3], %s2498_s12 }
 0x109   : > { %3093 = dma.done.wait (%p3492_p0), %s536_s15, 384  }
 0x10a   : > { %3095 = vsyncadd (%p3492_p0), %s536_s15, 4294966912  ;;  %p3813_p9 = scmp.ne.s32.totalorder %s3791_s30, 0 }
 0x10c   : > { %3097 = dma.done.wait (%p3813_p9), [#allocation7], 6160  }
 0x10d   : > { %3099 = vsyncadd (%p3813_p9), [#allocation7], 4294961136 }
 0x10e   : > { %3101 = dma.done.wait (%p3813_p9), [#allocation10], 4112  }
 0x10f   : > { %3103 = vsyncadd (%p3813_p9), [#allocation10], 4294963184 }
 0x110   : > { %3105 = dma.done.wait (%p3813_p9), [#allocation13], 5120  }
 0x111   : > { %3107 = vsyncadd (%p3813_p9), [#allocation13], 4294962176  ;;  %s3768_s7 = sand.u32 1, %s3118_s19   ;;  %s3814_s1 = sld [smem:[#allocation22_spill]] }
 0x112   : > { %s3584_s5 = scalar_lea.vmem [#allocation15], %s3768_s7 }
 0x117   : > { %p2215_p0 = scmp.ne.s32.totalorder %s3814_s1, 0 }
 0x118   : > { %v3167_v0 = vmov (!%p2215_p0), 0.0  }
 0x119   : > { %613 = sbr.rel (%p2215_p0) target bundleno = 288 (0x120), region = 112  ;;  %614 = vst [vmem:[#allocation2] sm:$0x1] (!%p2215_p0), %v3167_v0 }
 0x120 PF: > { %v2670_v1 = vld [vmem:[#allocation6 + $0x40] sm:$0xff]   ;;  %v2674_v5 = vld [vmem:[#allocation6 + $0x48] sm:$0xff]   ;;  %v2678_v9 = vld [vmem:[#allocation6 + $0x50] sm:$0xff]   ;;  %s3815_s29 = sld [smem:[#allocation27_spill]]  ;;  %s3816_s10 = sld [smem:[#allocation22_spill]] }
 0x121   : > { %v2671_v2 = vld [vmem:[#allocation6] sm:$0xff]   ;;  %2356 = vmatprep.subr.bf16.mxu0 %v2670_v1  ;;  %v2675_v6 = vld [vmem:[#allocation6 + $0x8] sm:$0xff]   ;;  %v2679_v10 = vld [vmem:[#allocation6 + $0x10] sm:$0xff]  }
 0x122   : > { %v2672_v3 = vld [vmem:[#allocation6 + $0xc0] sm:$0xff]   ;;  %2357 = vmatpush3.bf16.msra.mxu0 %v2671_v2  ;;  %v2676_v7 = vld [vmem:[#allocation6 + $0xc8] sm:$0xff]   ;;  %v2680_v11 = vld [vmem:[#allocation6 + $0xd0] sm:$0xff]  }
 0x123   : > { %v2673_v4 = vld [vmem:[#allocation6 + $0x80] sm:$0xff]   ;;  %2378 = vmatprep.subr.bf16.mxu1 %v2672_v3  ;;  %2358 = vmatprep.subr.bf16.mxu0 %v2674_v5  ;;  %v2677_v8 = vld [vmem:[#allocation6 + $0x88] sm:$0xff]   ;;  %v2681_v12 = vld [vmem:[#allocation6 + $0x90] sm:$0xff]  }
 0x124   : > { %2379 = vmatpush3.bf16.msra.mxu1 %v2673_v4  ;;  %v2682_v13 = vld [vmem:[#allocation6 + $0x58] sm:$0xff]   ;;  %v2686_v17 = vld [vmem:[#allocation6 + $0x60] sm:$0xff]   ;;  %v2690_v21 = vld [vmem:[#allocation6 + $0x68] sm:$0xff]  }
 0x125   : > { %2380 = vmatprep.subr.bf16.mxu1 %v2676_v7  ;;  %v2683_v14 = vld [vmem:[#allocation6 + $0x18] sm:$0xff]   ;;  %v2687_v18 = vld [vmem:[#allocation6 + $0x20] sm:$0xff]   ;;  %v2691_v22 = vld [vmem:[#allocation6 + $0x28] sm:$0xff]  }
 0x126   : > { %2359 = vmatpush3.bf16.msra.mxu0 %v2675_v6  ;;  %v2684_v15 = vld [vmem:[#allocation6 + $0xd8] sm:$0xff]   ;;  %v2688_v19 = vld [vmem:[#allocation6 + $0xe0] sm:$0xff]   ;;  %v2692_v23 = vld [vmem:[#allocation6 + $0xe8] sm:$0xff]   ;;  %s2273_s16 = sshll.u32 %s3816_s10, 3  ;;  %p2274_p3 = scmp.ne.s32.totalorder %s3816_s10, 2 }
 0x127   : > { %2360 = vmatprep.subr.bf16.mxu0 %v2678_v9  ;;  %v2685_v16 = vld [vmem:[#allocation6 + $0x98] sm:$0xff]   ;;  %v2689_v20 = vld [vmem:[#allocation6 + $0xa0] sm:$0xff]   ;;  %v2693_v24 = vld [vmem:[#allocation6 + $0xa8] sm:$0xff]   ;;  %vm1205_vm1 = vcmask (!%p2274_p3), 1040384   ;;  %s3817_s24 = sld [smem:[#allocation30_spill]] (!%p2274_p3)  ;;  %s3819_s15 = sld [smem:[#allocation31_spill]] (!%p2274_p3) }
 0x128   : > { %2381 = vmatpush3.bf16.msra.mxu1 %v2677_v8  ;;  %v2694_v25 = vld [vmem:[#allocation6 + $0x70] sm:$0xff]   ;;  %v2698_v29 = vld [vmem:[#allocation6 + $0x78] sm:$0xff]   ;;  %v2704_v36 = vld [vmem:[#allocation6 + $0x140] sm:$0xff]   ;;  %s3820_s30 = sld [smem:[#allocation33_spill]] (!%p2274_p3)  ;;  %s3821_s10 = sld [smem:[#allocation35_spill]] (!%p2274_p3)  ;;  %vm3170_vm2 = vmmov (!%p2274_p3), 0  }
 0x129   : > { %2382 = vmatprep.subr.bf16.mxu1 %v2680_v11  ;;  %v2695_v26 = vld [vmem:[#allocation6 + $0x30] sm:$0xff]   ;;  %v2699_v30 = vld [vmem:[#allocation6 + $0x38] sm:$0xff]   ;;  %v2707_v40 = vld [vmem:[#allocation6 + $0x100] sm:$0xff]   ;;  %s3822_s2 = sld [smem:[#allocation36_spill]] (!%p2274_p3)  ;;  %s3823_s12 = sld [smem:[#allocation37_spill]] (!%p2274_p3) }
 0x12a   : > { %2361 = vmatpush3.bf16.msra.mxu0 %v2679_v10  ;;  %v2696_v27 = vld [vmem:[#allocation6 + $0xf0] sm:$0xff]   ;;  %v2700_v31 = vld [vmem:[#allocation6 + $0xf8] sm:$0xff]   ;;  %v2708_v41 = vld [vmem:[#allocation6 + $0x148] sm:$0xff]  }
 0x12b   : > { %2362 = vmatprep.subr.bf16.mxu0 %v2682_v13  ;;  %v2697_v28 = vld [vmem:[#allocation6 + $0xb0] sm:$0xff]   ;;  %v2703_v35 = vld [vmem:[#allocation6 + $0xb8] sm:$0xff]   ;;  %v2709_v42 = vld [vmem:[#allocation6 + $0x108] sm:$0xff]  }
 0x12c   : > { %2383 = vmatpush3.bf16.msra.mxu1 %v2681_v12  ;;  %v615_v32 = vld [vmem:[%s3563_s3] sm:$0xff]  ;;  %v616_v37 = vld [vmem:[%s3563_s3 + $0x8] sm:$0xff]  ;;  %v2714_v47 = vld [vmem:[#allocation6 + $0x160] sm:$0xff]  }
 0x12d   : > { %2384 = vmatprep.subr.bf16.mxu1 %v2684_v15  ;;  %v2217_v33 = vcombine.low %v615_v32, %v615_v32  ;;  %v2218_v34 = vcombine.high %v615_v32, %v615_v32  ;;  %v2219_v38 = vcombine.low %v616_v37, %v616_v37  ;;  %v2220_v39 = vcombine.high %v616_v37, %v616_v37  ;;  %v2710_v43 = vld [vmem:[#allocation6 + $0x150] sm:$0xff]   ;;  %v2712_v45 = vld [vmem:[#allocation6 + $0x158] sm:$0xff]   ;;  %v2715_v48 = vld [vmem:[#allocation6 + $0x120] sm:$0xff]   ;;  %s3818_s9 = smov (!%p2274_p3), %s3817_s24 }
 0x12e   : > { %2363 = vmatpush3.bf16.msra.mxu0 %v2683_v14  ;;  %v2711_v44 = vld [vmem:[#allocation6 + $0x110] sm:$0xff]   ;;  %v2713_v46 = vld [vmem:[#allocation6 + $0x118] sm:$0xff]   ;;  %v2716_v50 = vld [vmem:[#allocation6 + $0x168] sm:$0xff]  }
 0x12f   : > { %2364 = vmatprep.subr.bf16.mxu0 %v2686_v17  ;;  %1062 = vmatprep.mubr.bf16.mxu0 %v2218_v34  ;;  %v617_v49 = vld [vmem:[%s3563_s3 + $0x10] sm:$0xff]  ;;  %v2717_v52 = vld [vmem:[#allocation6 + $0x128] sm:$0xff]   ;;  %v2718_v53 = vld [vmem:[#allocation6 + $0x170] sm:$0xff]  }
 0x130   : > { %2385 = vmatpush3.bf16.msra.mxu1 %v2685_v16  ;;  %1102 = vmatprep.mubr.bf16.mxu1 %v2220_v39  ;;  %v2222_v51 = vcombine.high %v617_v49, %v617_v49  ;;  %v2719_v54 = vld [vmem:[#allocation6 + $0x130] sm:$0xff]   ;;  %v2720_v55 = vld [vmem:[#allocation6 + $0x178] sm:$0xff]   ;;  %v2221_v57 = vcombine.low %v617_v49, %v617_v49  ;;  %v2216_v59 = vld [vmem:[%s3815_s29] ss:$0 sm:$0xff] }
 0x131   : > { %2386 = vmatprep.subr.bf16.mxu1 %v2688_v19  ;;  %v2721_v56 = vld [vmem:[#allocation6 + $0x138] sm:$0xff]   ;;  %v2728_v49 = vld [vmem:[#allocation11] ss:$8 sps:$4 sm:$0xff] (!%p2274_p3)  }
 0x132   : > { %2365 = vmatpush3.bf16.msra.mxu0 %v2687_v18 }
 0x133   : > { %2366 = vmatprep.subr.bf16.mxu0 %v2690_v21 }
 0x134   : > { %2387 = vmatpush3.bf16.msra.mxu1 %v2689_v20 }
 0x135   : > { %2388 = vmatprep.subr.bf16.mxu1 %v2692_v23 }
 0x136   : > { %2367 = vmatpush3.bf16.msra.mxu0 %v2691_v22  ;;  %v1182_v22 = vlaneseq }
 0x137   : > { %2368 = vmatprep.subr.bf16.mxu0 %v2694_v25  ;;  %v1184_v25 = vstv %s2273_s16 }
 0x138   : > { %2389 = vmatpush3.bf16.msra.mxu1 %v2693_v24  ;;  %v3594_v23 = vshrl.u32 %v1182_v22, 7 }
 0x139   : > { %2390 = vmatprep.subr.bf16.mxu1 %v2696_v27  ;;  %v2271_v27 = vld [vmem:[#allocation8] ss:$0 sm:$0xff] }
 0x13a   : > { %2369 = vmatpush3.bf16.msra.mxu0 %v2695_v26 }
 0x13b   : > { %2370 = vmatprep.subr.bf16.mxu0 %v2698_v29  ;;  %v2272_v29 = vld [vmem:[#allocation9] ss:$0 sm:$0xff] }
 0x13c   : > { %2391 = vmatpush3.bf16.msra.mxu1 %v2697_v28 }
 0x13d   : > { %2392 = vmatprep.subr.bf16.mxu1 %v2700_v31 }
 0x13e   : > { %2371 = vmatpush3.bf16.msra.mxu0 %v2699_v30  ;;  %v1185_v30 = vadd.s32 %v1184_v25, %v3594_v23 }
 0x13f   : > { %2400 = vmatprep.subr.bf16.mxu0 %v2704_v36 }
 0x140   : > { %2393 = vmatpush3.bf16.msra.mxu1 %v2703_v35  ;;  %vm1186_vm0 = vcmp.lt.s32.totalorder %v1185_v30, 20  ;;  %v2762_v30 = vld [vmem:[#allocation12 + $0x70] sm:$0xff] (!%p2274_p3)  }
 0x141   : > { %1063 = vmatmul.mubr.bf16.vlgmr.msra.gmra.mrb[0].mxu0 %v2217_v33 }
 0x142   : > { %2401 = vmatpush3.bf16.msra.mxu0 %v2707_v40  ;;  %1142 = vmatprep.mubr.bf16.mxu0 %v2222_v51  ;;  %v1188_v40 = vld [vmem:[#allocation2] sm:$0x1]  ;;  %v2731_v51 = vld [vmem:[#allocation11 + $0x10] ss:$8 sps:$4 sm:$0xff] (!%p2274_p3)  }
 0x143   : > { %1103 = vmatmul.mubr.bf16.vlgmr.msra.gmra.mrb[0].mxu1 %v2219_v38  ;;  %2402 = vmatprep.subr.bf16.mxu0 %v2708_v41 }
 0x146   : > { %2403 = vmatpush3.bf16.msra.mxu0 %v2709_v42 }
 0x147   : > { %2404 = vmatprep.subr.bf16.mxu0 %v2710_v43 }
 0x14a   : > { %2405 = vmatpush3.bf16.msra.mxu0 %v2711_v44 }
 0x14b   : > { %2406 = vmatprep.subr.bf16.mxu0 %v2712_v45  ;;  %v2726_v45 = vld [vmem:[#allocation11 + $0x4] ss:$8 sps:$4 sm:$0xff] (!%p2274_p3)  }
 0x14e   : > { %2407 = vmatpush3.bf16.msra.mxu0 %v2713_v46 }
 0x14f   : > { %2408 = vmatprep.subr.bf16.mxu0 %v2714_v47 }
 0x152   : > { %2409 = vmatpush3.bf16.msra.mxu0 %v2715_v48 }
 0x153   : > { %2410 = vmatprep.subr.bf16.mxu0 %v2716_v50  ;;  %v2729_v50 = vld [vmem:[#allocation11 + $0x14] ss:$8 sps:$4 sm:$0xff] (!%p2274_p3)  }
 0x156   : > { %2411 = vmatpush3.bf16.msra.mxu0 %v2717_v52  ;;  %v2732_v52 = vld [vmem:[#allocation11 + $0x24] ss:$8 sps:$4 sm:$0xff] (!%p2274_p3)  }
 0x157   : > { %2412 = vmatprep.subr.bf16.mxu0 %v2718_v53  ;;  %v2734_v53 = vld [vmem:[#allocation11 + $0x20] ss:$8 sps:$4 sm:$0xff] (!%p2274_p3)  }
 0x15a   : > { %2413 = vmatpush3.bf16.msra.mxu0 %v2719_v54  ;;  %v2735_v54 = vld [vmem:[#allocation11 + $0x34] ss:$8 sps:$4 sm:$0xff] (!%p2274_p3)  }
 0x15b   : > { %2414 = vmatprep.subr.bf16.mxu0 %v2720_v55  ;;  %v2737_v55 = vld [vmem:[#allocation11 + $0x30] ss:$8 sps:$4 sm:$0xff] (!%p2274_p3)  }
 0x15e   : > { %2415 = vmatpush3.bf16.msra.mxu0 %v2721_v56  ;;  %v2738_v56 = vld [vmem:[#allocation11 + $0x44] ss:$8 sps:$4 sm:$0xff] (!%p2274_p3)  }
 0x15f   : > { %1333 = vmatprep.subr.bf16.mxu0 (!%p2274_p3), %v2726_v45 }
 0x161   : > { %1143 = vmatmul.mubr.bf16.vlgmr.msra.gmra.mrb[4].mxu0 %v2221_v57  ;;  %v2740_v57 = vld [vmem:[#allocation11 + $0x40] ss:$8 sps:$4 sm:$0xff] (!%p2274_p3)  }
 0x162   : > { %1334 = vmatpush1.bf16.msra.mxu0 (!%p2274_p3), %v2728_v49 }
 0x163   : > { %1335 = vmatprep.subr.bf16.mxu0 (!%p2274_p3), %v2729_v50  ;;  %v1410_v50 = vld [vmem:[%s3821_s10] sm:$0x1] (!%p2274_p3) }
 0x166   : > { %1336 = vmatpush1.bf16.msra.mxu0 (!%p2274_p3), %v2731_v51 }
 0x167   : > { %1337 = vmatprep.subr.bf16.mxu0 (!%p2274_p3), %v2732_v52 }
 0x16a   : > { %1338 = vmatpush1.bf16.msra.mxu0 (!%p2274_p3), %v2734_v53 }
 0x16b   : > { %1339 = vmatprep.subr.bf16.mxu0 (!%p2274_p3), %v2735_v54 }
 0x16e   : > { %1340 = vmatpush1.bf16.msra.mxu0 (!%p2274_p3), %v2737_v55 }
 0x16f   : > { %1341 = vmatprep.subr.bf16.mxu0 (!%p2274_p3), %v2738_v56 }
 0x172   : > { %1342 = vmatpush1.bf16.msra.mxu0 (!%p2274_p3), %v2740_v57 }
 0x214   : > { %v2372_v58 = vpop.f32.mrb[0].mxu0 }
 0x215   : > { %v2373_v60 = vpop.f32.mrb[1].mxu0 }
 0x216   : > { %v2374_v61 = vadd.f32 %v2373_v60, %v2372_v58  ;;  %v2375_v62 = vpop.f32.mrb[2].mxu0  ;;  %v2394_v63 = vpop.f32.mrb[0].mxu1  ;;  %v2741_v58 = vld [vmem:[#allocation11 + $0x54] ss:$8 sps:$4 sm:$0xff] (!%p2274_p3)   ;;  %v2744_v60 = vld [vmem:[#allocation11 + $0x64] ss:$8 sps:$4 sm:$0xff] (!%p2274_p3)  }
 0x217   : > { %v2376_v0 = vpop.f32.mrb[3].mxu0  ;;  %v2395_v1 = vpop.f32.mrb[1].mxu1  ;;  %1343 = vmatprep.subr.bf16.mxu0 (!%p2274_p3), %v2741_v58  ;;  %v2746_v62 = vld [vmem:[#allocation11 + $0x60] ss:$8 sps:$4 sm:$0xff] (!%p2274_p3)  }
 0x218   : > { %v1065_v2 = vadd.f32 %v2374_v61, %v2216_v59  ;;  %v2396_v3 = vadd.f32 %v2395_v1, %v2394_v63  ;;  %v2397_v4 = vpop.f32.mrb[2].mxu1  ;;  %v2743_v59 = vld [vmem:[#allocation11 + $0x50] ss:$8 sps:$4 sm:$0xff] (!%p2274_p3)   ;;  %v3168_v61 = vmov (!%p2274_p3), 0   ;;  %v2747_v63 = vld [vmem:[#allocation11 + $0x74] ss:$8 sps:$4 sm:$0xff] (!%p2274_p3)  }
 0x219   : > { %v2398_v5 = vpop.f32.mrb[3].mxu1  ;;  %1365 = vmatprep.mubr.bf16.mxu0 (!%p2274_p3), %v3168_v61  ;;  %1344 = vmatpush1.bf16.msra.mxu0 (!%p2274_p3), %v2743_v59  ;;  %v2749_v0 = vld [vmem:[#allocation11 + $0x70] ss:$8 sps:$4 sm:$0xff] (!%p2274_p3)   ;;  %v2750_v1 = vld [vmem:[#allocation12 + $0x40] sm:$0xff] (!%p2274_p3)   ;;  %v2753_v4 = vld [vmem:[#allocation12 + $0x8] sm:$0xff] (!%p2274_p3)  }
 0x21a   : > { %v1105_v6 = vadd.f32 %v2396_v3, %v1065_v2  ;;  %1345 = vmatprep.subr.bf16.mxu0 (!%p2274_p3), %v2744_v60  ;;  %v2751_v2 = vld [vmem:[#allocation12] sm:$0xff] (!%p2274_p3)   ;;  %v2752_v3 = vld [vmem:[#allocation12 + $0x48] sm:$0xff] (!%p2274_p3)   ;;  %2422 = vmatprep.subr.bf16.mxu1 (!%p2274_p3), %v2750_v1  ;;  %v2754_v5 = vld [vmem:[#allocation12 + $0x50] sm:$0xff] (!%p2274_p3)  }
 0x21b   : > { %2423 = vmatpush3.bf16.msra.mxu1 (!%p2274_p3), %v2751_v2  ;;  %v2766_v59 = vld [vmem:[#allocation11 + $0x80] ss:$8 sps:$4 sm:$0xff] (!%p2274_p3)   ;;  %v2768_v60 = vld [vmem:[#allocation11 + $0x84] ss:$8 sps:$4 sm:$0xff] (!%p2274_p3)  }
 0x21c   : > { %2424 = vmatprep.subr.bf16.mxu1 (!%p2274_p3), %v2752_v3 }
 0x21d   : > { %1346 = vmatpush1.bf16.msra.mxu0 (!%p2274_p3), %v2746_v62 }
 0x21e   : > { %1347 = vmatprep.subr.bf16.mxu0 (!%p2274_p3), %v2747_v63 }
 0x21f   : > { %2425 = vmatpush3.bf16.msra.mxu1 (!%p2274_p3), %v2753_v4 }
 0x220   : > { %2426 = vmatprep.subr.bf16.mxu1 (!%p2274_p3), %v2754_v5 }
 0x221   : > { %1348 = vmatpush1.bf16.msra.mxu0 (!%p2274_p3), %v2749_v0 }
 0x222   : > { %1701 = vmatprep.subr.bf16.mxu0 (!%p2274_p3), %v2768_v60 }
 0x234   : > { %v2416_v7 = vpop.f32.mrb[4].mxu0 }
 0x235   : > { %v2417_v8 = vpop.f32.mrb[5].mxu0 }
 0x236   : > { %v2418_v9 = vadd.f32 %v2417_v8, %v2416_v7  ;;  %v2419_v10 = vpop.f32.mrb[6].mxu0  ;;  %v2756_v7 = vld [vmem:[#allocation12 + $0x58] sm:$0xff] (!%p2274_p3)  }
 0x237   : > { %v2420_v11 = vpop.f32.mrb[7].mxu0  ;;  %v2757_v8 = vld [vmem:[#allocation12 + $0x18] sm:$0xff] (!%p2274_p3)   ;;  %v2759_v10 = vld [vmem:[#allocation12 + $0x20] sm:$0xff] (!%p2274_p3)  }
 0x238   : > { %v1145_v12 = vadd.f32 %v2418_v9, %v1105_v6  ;;  %v2755_v6 = vld [vmem:[#allocation12 + $0x10] sm:$0xff] (!%p2274_p3)   ;;  %v2758_v9 = vld [vmem:[#allocation12 + $0x60] sm:$0xff] (!%p2274_p3)   ;;  %v2760_v11 = vld [vmem:[#allocation12 + $0x68] sm:$0xff] (!%p2274_p3)  }
 0x239   : > { %2427 = vmatpush3.bf16.msra.mxu1 (!%p2274_p3), %v2755_v6 }
 0x23a   : > { %1152 = vadd.xlane.f32.xlu0 %v1145_v12  ;;  %v1154_v13 = vmul.f32 %v1145_v12, %v1145_v12  ;;  %2428 = vmatprep.subr.bf16.mxu1 (!%p2274_p3), %v2756_v7  ;;  %v1547_v7 = vld [vmem:[%s3822_s2] sm:$0x1] (!%p2274_p3) }
 0x23d   : > { %2429 = vmatpush3.bf16.msra.mxu1 (!%p2274_p3), %v2757_v8 }
 0x23e   : > { %1155 = vadd.xlane.f32.xlu0 %v1154_v13  ;;  %2430 = vmatprep.subr.bf16.mxu1 (!%p2274_p3), %v2758_v9  ;;  %v1548_v9 = vld [vmem:[%s3823_s12] sm:$0x1] (!%p2274_p3) }
 0x241   : > { %2431 = vmatpush3.bf16.msra.mxu1 (!%p2274_p3), %v2759_v10 }
 0x242   : > { %2432 = vmatprep.subr.bf16.mxu1 (!%p2274_p3), %v2760_v11 }
 0x2c7   : > { %v1153_v14 = vpop.xlane.xlu0 %1152 }
 0x2c8   : > { %v1157_v15 = vmul.f32 0.0078125, %v1153_v14 }
 0x2ca   : > { %v1159_v17 = vmul.f32 %v1157_v15, %v1157_v15  ;;  %v1162_v24 = vsub.f32 %v1145_v12, %v1157_v15  ;;  %v2761_v12 = vld [vmem:[#allocation12 + $0x28] sm:$0xff] (!%p2274_p3)  }
 0x2cb   : > { %v1156_v16 = vpop.xlane.xlu0 %1155  ;;  %2433 = vmatpush3.bf16.msra.mxu1 (!%p2274_p3), %v2761_v12 }
 0x2cc   : > { %v1158_v18 = vmul.f32 0.0078125, %v1156_v16  ;;  %2434 = vmatprep.subr.bf16.mxu1 (!%p2274_p3), %v2762_v30  ;;  %v2787_v30 = vld [vmem:[#allocation11 + $0xf0] ss:$8 sps:$4 sm:$0xff] (!%p2274_p3)  }
 0x2ce   : > { %v1160_v19 = vsub.f32 %v1158_v18, %v1159_v17 }
 0x2d0   : > { %v1161_v20 = vmax.f32 %v1160_v19, 0.0 }
 0x2d2   : > { %v1163_v21 = vadd.f32 1e-05, %v1161_v20 }
 0x2d4   : > { %2724 = vrsqrt.f32 %v1163_v21 }
 0x2de   : > { %v2725_v26 = vpop.eup %2724 }
 0x2df   : > { %v1165_v28 = vmul.f32 %v2725_v26, %v1162_v24  ;;  %v1203_v24 = vld [vmem:[%s3817_s24] sm:$0x1] (!%p2274_p3)  ;;  %s3824_s24 = sld [smem:[#allocation38_spill]] (!%p2274_p3) }
 0x2e0   : > { %v1204_v26 = vld [vmem:[%s3819_s15] sm:$0x1] (!%p2274_p3) }
 0x2e1   : > { %v1172_v31 = vmul.f32 %v2271_v27, %v1165_v28 }
 0x2e3   : > { %v1179_v32 = vadd.f32 %v2272_v29, %v1172_v31  ;;  %v2763_v31 = vld [vmem:[#allocation12 + $0x30] sm:$0xff] (!%p2274_p3)  }
 0x2e4   : > { %2435 = vmatpush3.bf16.msra.mxu1 (!%p2274_p3), %v2763_v31  ;;  %v2790_v31 = vld [vmem:[#allocation12 + $0xc0] sm:$0xff] (!%p2274_p3)  }
 0x2e5   : > { %v1180_v33 = vmax.f32 %v1179_v32, 0.0  ;;  %v2764_v32 = vld [vmem:[#allocation12 + $0x78] sm:$0xff] (!%p2274_p3)  }
 0x2e6   : > { %2436 = vmatprep.subr.bf16.mxu1 (!%p2274_p3), %v2764_v32  ;;  %v2791_v32 = vld [vmem:[#allocation12 + $0x80] sm:$0xff] (!%p2274_p3)  }
 0x2e7   : > { %v1187_v34 = vsel %vm1186_vm0, %v1180_v33, 0.0  ;;  %v2765_v33 = vld [vmem:[#allocation12 + $0x38] sm:$0xff] (!%p2274_p3)  }
 0x2e8   : > { %v1189_v35 = vrot.slane %v1187_v34, 4  ;;  %2437 = vmatpush3.bf16.msra.mxu1 (!%p2274_p3), %v2765_v33  ;;  %v2792_v33 = vld [vmem:[#allocation12 + $0xc8] sm:$0xff] (!%p2274_p3)  }
 0x2e9   : > { %2444 = vmatprep.subr.bf16.mxu1 (!%p2274_p3), %v2790_v31 }
 0x2ea   : > { %v1190_v36 = vadd.f32 %v1189_v35, %v1187_v34  ;;  %v1325_v34 = vsub.s32 (!%p2274_p3), 0, %v3594_v23  ;;  %v1241_v35 = vld [vmem:[%s3820_s30] sm:$0x3] (!%p2274_p3) }
 0x2ec   : > { %v1191_v37 = vrot.slane %v1190_v36, 2 }
 0x2ee   : > { %v1192_v38 = vadd.f32 %v1191_v37, %v1190_v36  ;;  %v1329_v36 = vsub.s32 (!%p2274_p3), 1, %v3594_v23  ;;  %v1326_v37 = vrot.slane (!%p2274_p3), %v1241_v35, %v1325_v34  ;;  %v2326_v23 = vld [vmem:[%s3821_s10 + $0x1] sm:$0x1] (!%p2274_p3) }
 0x2f0   : > { %v1193_v39 = vrot.slane %v1192_v38, 1  ;;  %1200 = sbr.rel (%p2274_p3) target bundleno = 2551 (0x9f7), region = 116 }
 0x2f2   : > { %v1194_v41 = vadd.f32 %v1193_v39, %v1192_v38  ;;  %v1330_v38 = vrot.slane (!%p2274_p3), %v1241_v35, %v1329_v36  ;;  %v2793_v35 = vld [vmem:[#allocation12 + $0x88] sm:$0xff] (!%p2274_p3)  }
 0x2f4   : > { %v1195_v42 = vadd.f32 %v1194_v41, %v1188_v40 }
 0x2f6   : > { %1196 = vst [vmem:[#allocation2] sm:$0x1] %v1195_v42 }
 0x2fd   : > { %v1201_v43 = vld [vmem:[#allocation2] sm:$0x1] }
 0x2fe   : > { %v3598_v44 = vmul.f32 0.05, %v1201_v43 }
 0x300   : > { %v1206_v46 = vsel %vm1205_vm1, %v3598_v44, 0.0  ;;  %v1209_v47 = vmul.f32 %v3598_v44, %v3598_v44 }
 0x301   : > { %1207 = vadd.xlane.f32.xlu0 %v1206_v46 }
 0x302   : > { %v1210_v48 = vsel %vm1205_vm1, %v1209_v47, 0.0 }
 0x305   : > { %1211 = vadd.xlane.f32.xlu0 %v1210_v48 }
 0x38e   : > { %v1208_v13 = vpop.xlane.xlu0 %1207 }
 0x38f   : > { %v1213_v14 = vmul.f32 0.0078125, %v1208_v13 }
 0x391   : > { %v1215_v16 = vmul.f32 %v1213_v14, %v1213_v14  ;;  %v1218_v21 = vsub.f32 %v3598_v44, %v1213_v14 }
 0x392   : > { %v1212_v15 = vpop.xlane.xlu0 %1211 }
 0x393   : > { %v1214_v17 = vmul.f32 0.0078125, %v1212_v15 }
 0x395   : > { %v1216_v18 = vsub.f32 %v1214_v17, %v1215_v16  ;;  %v2771_v16 = vld [vmem:[#allocation11 + $0x94] ss:$8 sps:$4 sm:$0xff]   ;;  %v2769_v17 = vld [vmem:[#allocation11 + $0x90] ss:$8 sps:$4 sm:$0xff]  }
 0x397   : > { %v1217_v19 = vmax.f32 %v1216_v18, 0.0  ;;  %v2774_v18 = vld [vmem:[#allocation11 + $0xa4] ss:$8 sps:$4 sm:$0xff]  }
 0x399   : > { %v1219_v20 = vadd.f32 1e-05, %v1217_v19  ;;  %v2772_v19 = vld [vmem:[#allocation11 + $0xa0] ss:$8 sps:$4 sm:$0xff]  }
 0x39b   : > { %2814 = vrsqrt.f32 %v1219_v20  ;;  %v2777_v20 = vld [vmem:[#allocation11 + $0xb4] ss:$8 sps:$4 sm:$0xff]  }
 0x3a5   : > { %v2815_v22 = vpop.eup %2814 }
 0x3a6   : > { %v1221_v25 = vmul.f32 %v2815_v22, %v1218_v21  ;;  %v2775_v21 = vld [vmem:[#allocation11 + $0xb0] ss:$8 sps:$4 sm:$0xff]   ;;  %v2778_v22 = vld [vmem:[#allocation11 + $0xc0] ss:$8 sps:$4 sm:$0xff]  }
 0x3a8   : > { %v1222_v27 = vmul.f32 %v1221_v25, %v1203_v24  ;;  %v2780_v24 = vld [vmem:[#allocation11 + $0xc4] ss:$8 sps:$4 sm:$0xff]   ;;  %v2783_v25 = vld [vmem:[#allocation11 + $0xd4] ss:$8 sps:$4 sm:$0xff]  }
 0x3aa   : > { %v1223_v28 = vadd.f32 %v1222_v27, %v1204_v26  ;;  %v2781_v26 = vld [vmem:[#allocation11 + $0xd0] ss:$8 sps:$4 sm:$0xff]   ;;  %v2786_v27 = vld [vmem:[#allocation11 + $0xe4] ss:$8 sps:$4 sm:$0xff]  }
 0x3ac   : > { %v1224_v29 = vpack.c.bf16 %v1223_v28, %v1223_v28 }
 0x3ae   : > { %1366 = vmatmul.mubr.bf16.vlgmr.msra.gmra.mrb[0].mxu0 %v1224_v29  ;;  %v2789_v29 = vld [vmem:[#allocation11 + $0xf4] ss:$8 sps:$4 sm:$0xff]  }
 0x3af   : > { %1733 = vmatprep.mubr.bf16.mxu0 %v3168_v61  ;;  %1702 = vmatpush1.bf16.msra.mxu0 %v2766_v59 }
 0x3b0   : > { %1703 = vmatprep.subr.bf16.mxu0 %v2771_v16 }
 0x3b3   : > { %1704 = vmatpush1.bf16.msra.mxu0 %v2769_v17 }
 0x3b4   : > { %1705 = vmatprep.subr.bf16.mxu0 %v2774_v18 }
 0x3b7   : > { %1706 = vmatpush1.bf16.msra.mxu0 %v2772_v19 }
 0x3b8   : > { %1707 = vmatprep.subr.bf16.mxu0 %v2777_v20 }
 0x3bb   : > { %1708 = vmatpush1.bf16.msra.mxu0 %v2775_v21 }
 0x3bc   : > { %1709 = vmatprep.subr.bf16.mxu0 %v2780_v24  ;;  %v2807_v24 = vld [vmem:[#allocation14 + $0x8] sm:$0xff]  }
 0x3bf   : > { %1710 = vmatpush1.bf16.msra.mxu0 %v2778_v22  ;;  %v2806_v22 = vld [vmem:[#allocation14] sm:$0xff]  }
 0x3c0   : > { %1711 = vmatprep.subr.bf16.mxu0 %v2783_v25  ;;  %v2808_v25 = vld [vmem:[#allocation14 + $0x10] sm:$0xff]  }
 0x3c3   : > { %1712 = vmatpush1.bf16.msra.mxu0 %v2781_v26  ;;  %v2809_v26 = vld [vmem:[#allocation14 + $0x18] sm:$0xff]  }
 0x3c4   : > { %1713 = vmatprep.subr.bf16.mxu0 %v2786_v27  ;;  %v2810_v27 = vld [vmem:[#allocation14 + $0x20] sm:$0xff]  }
 0x481   : > { %v1367_v39 = vpop.f32.mrb[0].mxu0 }
 0x482   : > { %v1368_v40 = vadd.f32 %v1367_v39, %v1326_v37  ;;  %v1369_v41 = vpop.f32.mrb[1].mxu0  ;;  %v2794_v37 = vld [vmem:[#allocation12 + $0xd0] sm:$0xff]   ;;  %v2796_v39 = vld [vmem:[#allocation12 + $0xd8] sm:$0xff]  }
 0x483   : > { %v1370_v42 = vadd.f32 %v1369_v41, %v1330_v38  ;;  %v1371_v43 = vpop.f32.mrb[2].mxu0  ;;  %v2795_v38 = vld [vmem:[#allocation12 + $0x90] sm:$0xff]   ;;  %v2798_v41 = vld [vmem:[#allocation12 + $0xe0] sm:$0xff]  }
 0x484   : > { %v1374_v44 = vmax.f32 %v1368_v40, 0.0  ;;  %v1372_v45 = vpop.f32.mrb[3].mxu0  ;;  %v2797_v40 = vld [vmem:[#allocation12 + $0x98] sm:$0xff]   ;;  %v2800_v43 = vld [vmem:[#allocation12 + $0xe8] sm:$0xff]  }
 0x485   : > { %v1375_v46 = vmax.f32 %v1370_v42, 0.0  ;;  %v2799_v42 = vld [vmem:[#allocation12 + $0xa0] sm:$0xff]  }
 0x486   : > { %v1376_v48 = vpack.c.bf16 %v1374_v44, %v1374_v44  ;;  %v2801_v44 = vld [vmem:[#allocation12 + $0xa8] sm:$0xff]  }
 0x487   : > { %v1377_v47 = vpack.c.bf16 %v1375_v46, %v1375_v46 }
 0x489   : > { %1539 = vmatprep.mubr.bf16.mxu1 %v1377_v47 }
 0x48a   : > { %1540 = vmatmul.mubr.bf16.vlgmr.msra.gmra.mrb[0].mxu1 %v1376_v48 }
 0x48b   : > { %2445 = vmatpush3.bf16.msra.mxu1 %v2791_v32 }
 0x48c   : > { %2446 = vmatprep.subr.bf16.mxu1 %v2792_v33 }
 0x48f   : > { %2447 = vmatpush3.bf16.msra.mxu1 %v2793_v35 }
 0x490   : > { %2448 = vmatprep.subr.bf16.mxu1 %v2794_v37 }
 0x493   : > { %2449 = vmatpush3.bf16.msra.mxu1 %v2795_v38 }
 0x494   : > { %2450 = vmatprep.subr.bf16.mxu1 %v2796_v39 }
 0x497   : > { %2451 = vmatpush3.bf16.msra.mxu1 %v2797_v40 }
 0x498   : > { %2452 = vmatprep.subr.bf16.mxu1 %v2798_v41 }
 0x49b   : > { %2453 = vmatpush3.bf16.msra.mxu1 %v2799_v42 }
 0x49c   : > { %2454 = vmatprep.subr.bf16.mxu1 %v2800_v43  ;;  %v2343_v43 = vld [vmem:[%s3822_s2 + $0x1] sm:$0x1] }
 0x49f   : > { %2455 = vmatpush3.bf16.msra.mxu1 %v2801_v44 }
 0x55d   : > { %v2438_v49 = vpop.f32.mrb[0].mxu1 }
 0x55e   : > { %v2439_v51 = vpop.f32.mrb[1].mxu1 }
 0x55f   : > { %v2440_v52 = vadd.f32 %v2439_v51, %v2438_v49  ;;  %v2441_v53 = vpop.f32.mrb[2].mxu1 }
 0x560   : > { %v2442_v54 = vpop.f32.mrb[3].mxu1 }
 0x561   : > { %v1542_v55 = vadd.f32 %v2440_v52, %v1410_v50 }
 0x563   : > { %v1549_v56 = vsel %vm1205_vm1, %v1542_v55, 0.0  ;;  %v1552_v57 = vmul.f32 %v1542_v55, %v1542_v55 }
 0x564   : > { %1550 = vadd.xlane.f32.xlu1 %v1549_v56 }
 0x565   : > { %v1553_v58 = vsel %vm1205_vm1, %v1552_v57, 0.0  ;;  %v2308_v57 = vld [vmem:[%s3819_s15 + $0x1] sm:$0x1] }
 0x568   : > { %1554 = vadd.xlane.f32.xlu1 %v1553_v58 }
 0x5f1   : > { %v1551_v61 = vpop.xlane.xlu1 %1550 }
 0x5f2   : > { %v1556_v62 = vmul.f32 0.0078125, %v1551_v61  ;;  %v2802_v61 = vld [vmem:[#allocation12 + $0xf0] sm:$0xff]  }
 0x5f3   : > { %2456 = vmatprep.subr.bf16.mxu1 %v2802_v61 }
 0x5f4   : > { %v1558_v0 = vmul.f32 %v1556_v62, %v1556_v62  ;;  %v1561_v5 = vsub.f32 %v1542_v55, %v1556_v62  ;;  %v2307_v55 = vld [vmem:[%s3818_s9 + $0x1] sm:$0x1]  ;;  %v2803_v62 = vld [vmem:[#allocation12 + $0xb0] sm:$0xff]  }
 0x5f5   : > { %v1555_v63 = vpop.xlane.xlu1 %1554  ;;  %2457 = vmatpush3.bf16.msra.mxu1 %v2803_v62 }
 0x5f6   : > { %v1557_v1 = vmul.f32 0.0078125, %v1555_v63  ;;  %v2804_v63 = vld [vmem:[#allocation12 + $0xf8] sm:$0xff]  }
 0x5f7   : > { %2458 = vmatprep.subr.bf16.mxu1 %v2804_v63 }
 0x5f8   : > { %v1559_v2 = vsub.f32 %v1557_v1, %v1558_v0  ;;  %v2805_v0 = vld [vmem:[#allocation12 + $0xb8] sm:$0xff]   ;;  %v2309_v1 = vld [vmem:[%s3820_s30 + $0x2] sm:$0x3] }
 0x5f9   : > { %2459 = vmatpush3.bf16.msra.mxu1 %v2805_v0 }
 0x5fa   : > { %v1560_v3 = vmax.f32 %v1559_v2, 0.0  ;;  %v1694_v2 = vrot.slane %v2309_v1, %v1325_v34 }
 0x5fc   : > { %v1562_v4 = vadd.f32 1e-05, %v1560_v3  ;;  %v1698_v3 = vrot.slane %v2309_v1, %v1329_v36 }
 0x5fe   : > { %2816 = vrsqrt.f32 %v1562_v4 }
 0x608   : > { %v2817_v6 = vpop.eup %2816 }
 0x609   : > { %v1564_v8 = vmul.f32 %v2817_v6, %v1561_v5 }
 0x60b   : > { %v1565_v10 = vmul.f32 %v1564_v8, %v1547_v7 }
 0x60d   : > { %v1566_v11 = vadd.f32 %v1565_v10, %v1548_v9 }
 0x60f   : > { %v3632_v12 = vadd.f32 %v1566_v11, %v1223_v28  ;;  %v2784_v28 = vld [vmem:[#allocation11 + $0xe0] ss:$8 sps:$4 sm:$0xff]  }
 0x610   : > { %1714 = vmatpush1.bf16.msra.mxu0 %v2784_v28  ;;  %v2811_v28 = vld [vmem:[#allocation14 + $0x28] sm:$0xff]  }
 0x611   : > { %v1572_v13 = vsel %vm1205_vm1, %v3632_v12, 0.0  ;;  %v1575_v14 = vmul.f32 %v3632_v12, %v3632_v12  ;;  %1715 = vmatprep.subr.bf16.mxu0 %v2789_v29  ;;  %v2812_v29 = vld [vmem:[#allocation14 + $0x30] sm:$0xff]  }
 0x612   : > { %1573 = vadd.xlane.f32.xlu0 %v1572_v13 }
 0x613   : > { %v1576_v15 = vsel %vm1205_vm1, %v1575_v14, 0.0  ;;  %v3169_v14 = vmov 0.0  }
 0x614   : > { %1577 = vadd.xlane.f32.xlu1 %v1576_v15  ;;  %1716 = vmatpush1.bf16.msra.mxu0 %v2787_v30  ;;  %v2813_v30 = vld [vmem:[#allocation14 + $0x38] sm:$0xff]  }
 0x615   : > { %2475 = vmatprep.subr.bf16.mxu0 %v3169_v14 }
 0x69f   : > { %v1574_v45 = vpop.xlane.xlu0 %1573 }
 0x6a0   : > { %v1579_v46 = vmul.f32 0.0078125, %v1574_v45  ;;  %v2344_v45 = vld [vmem:[%s3823_s12 + $0x1] sm:$0x1] }
 0x6a1   : > { %v1578_v47 = vpop.xlane.xlu1 %1577 }
 0x6a2   : > { %v1581_v48 = vmul.f32 %v1579_v46, %v1579_v46  ;;  %v1580_v49 = vmul.f32 0.0078125, %v1578_v47  ;;  %v1584_v53 = vsub.f32 %v3632_v12, %v1579_v46 }
 0x6a4   : > { %v1582_v50 = vsub.f32 %v1580_v49, %v1581_v48 }
 0x6a6   : > { %v1583_v51 = vmax.f32 %v1582_v50, 0.0  ;;  %v1957_v50 = vld [vmem:[%s3824_s24] sm:$0x1] }
 0x6a8   : > { %v1585_v52 = vadd.f32 1e-05, %v1583_v51 }
 0x6aa   : > { %2818 = vrsqrt.f32 %v1585_v52 }
 0x6b4   : > { %v2819_v54 = vpop.eup %2818 }
 0x6b5   : > { %v1587_v56 = vmul.f32 %v2819_v54, %v1584_v53 }
 0x6b7   : > { %v1588_v58 = vmul.f32 %v2307_v55, %v1587_v56 }
 0x6b9   : > { %v3646_v59 = vadd.f32 %v2308_v57, %v1588_v58 }
 0x6bb   : > { %v1590_v60 = vpack.c.bf16 %v3646_v59, %v3646_v59 }
 0x6bd   : > { %1734 = vmatmul.mubr.bf16.vlgmr.msra.gmra.mrb[4].mxu0 %v1590_v60 }
 0x6be   : > { %2476 = vmatpush3.bf16.msra.mxu0 %v2806_v22  ;;  %2491 = vmatprep.mubr.msk.bf16.mxu0 %vm3170_vm2, %v3169_v14 }
 0x6bf   : > { %2477 = vmatprep.subr.bf16.mxu0 %v3169_v14 }
 0x6c2   : > { %2478 = vmatpush3.bf16.msra.mxu0 %v2807_v24 }
 0x6c3   : > { %2479 = vmatprep.subr.bf16.mxu0 %v3169_v14 }
 0x6c6   : > { %2480 = vmatpush3.bf16.msra.mxu0 %v2808_v25 }
 0x6c7   : > { %2481 = vmatprep.subr.bf16.mxu0 %v3169_v14 }
 0x6ca   : > { %2482 = vmatpush3.bf16.msra.mxu0 %v2809_v26 }
 0x6cb   : > { %2483 = vmatprep.subr.bf16.mxu0 %v3169_v14 }
 0x6ce   : > { %2484 = vmatpush3.bf16.msra.mxu0 %v2810_v27 }
 0x6cf   : > { %2485 = vmatprep.subr.bf16.mxu0 %v3169_v14 }
 0x6d2   : > { %2486 = vmatpush3.bf16.msra.mxu0 %v2811_v28 }
 0x6d3   : > { %2487 = vmatprep.subr.bf16.mxu0 %v3169_v14 }
 0x6d6   : > { %2488 = vmatpush3.bf16.msra.mxu0 %v2812_v29 }
 0x6d7   : > { %2489 = vmatprep.subr.bf16.mxu0 %v3169_v14 }
 0x6da   : > { %2490 = vmatpush3.bf16.msra.mxu0 %v2813_v30 }
 0x790   : > { %v1735_v4 = vpop.f32.mrb[4].mxu0 }
 0x791   : > { %v1736_v5 = vadd.f32 %v1735_v4, %v1694_v2  ;;  %v1737_v6 = vpop.f32.mrb[5].mxu0 }
 0x792   : > { %v1738_v7 = vadd.f32 %v1737_v6, %v1698_v3  ;;  %v1739_v8 = vpop.f32.mrb[6].mxu0 }
 0x793   : > { %v1742_v9 = vmax.f32 %v1736_v5, 0.0  ;;  %v1740_v10 = vpop.f32.mrb[7].mxu0 }
 0x794   : > { %v1743_v11 = vmax.f32 %v1738_v7, 0.0 }
 0x795   : > { %v1744_v13 = vpack.c.bf16 %v1742_v9, %v1742_v9 }
 0x796   : > { %v1745_v12 = vpack.c.bf16 %v1743_v11, %v1743_v11 }
 0x798   : > { %1909 = vmatprep.mubr.bf16.mxu1 %v1745_v12 }
 0x799   : > { %1910 = vmatmul.mubr.bf16.vlgmr.msra.gmra.mrb[4].mxu1 %v1744_v13 }
 0x86c   : > { %v2460_v15 = vpop.f32.mrb[4].mxu1 }
 0x86d   : > { %v2461_v34 = vpop.f32.mrb[5].mxu1 }
 0x86e   : > { %v2462_v36 = vadd.f32 %v2461_v34, %v2460_v15  ;;  %v2463_v16 = vpop.f32.mrb[6].mxu1 }
 0x86f   : > { %v2464_v17 = vpop.f32.mrb[7].mxu1 }
 0x870   : > { %v1912_v18 = vadd.f32 %v2462_v36, %v2326_v23 }
 0x872   : > { %v1921_v19 = vsel %vm1205_vm1, %v1912_v18, 0.0  ;;  %v1924_v20 = vmul.f32 %v1912_v18, %v1912_v18 }
 0x873   : > { %1922 = vadd.xlane.f32.xlu0 %v1921_v19 }
 0x874   : > { %v1925_v21 = vsel %vm1205_vm1, %v1924_v20, 0.0 }
 0x875   : > { %1926 = vadd.xlane.f32.xlu1 %v1925_v21 }
 0x900   : > { %v1923_v31 = vpop.xlane.xlu0 %1922 }
 0x901   : > { %v1928_v32 = vmul.f32 0.0078125, %v1923_v31 }
 0x902   : > { %v1927_v33 = vpop.xlane.xlu1 %1926 }
 0x903   : > { %v1930_v35 = vmul.f32 %v1928_v32, %v1928_v32  ;;  %v1929_v37 = vmul.f32 0.0078125, %v1927_v33  ;;  %v1933_v41 = vsub.f32 %v1912_v18, %v1928_v32 }
 0x905   : > { %v1931_v38 = vsub.f32 %v1929_v37, %v1930_v35 }
 0x907   : > { %v1932_v39 = vmax.f32 %v1931_v38, 0.0 }
 0x909   : > { %v1934_v40 = vadd.f32 1e-05, %v1932_v39 }
 0x90b   : > { %2820 = vrsqrt.f32 %v1934_v40 }
 0x915   : > { %v2821_v42 = vpop.eup %2820 }
 0x916   : > { %v1936_v44 = vmul.f32 %v2821_v42, %v1933_v41 }
 0x918   : > { %v1937_v46 = vmul.f32 %v2343_v43, %v1936_v44 }
 0x91a   : > { %v1938_v47 = vadd.f32 %v2344_v45, %v1937_v46 }
 0x91c   : > { %v1939_v48 = vadd.f32 %v1938_v47, %v3646_v59 }
 0x91e   : > { %v1940_v49 = vpack.c.bf16 %v1939_v48, %v1939_v48 }
 0x920   : > { %2492 = vmatmul.mubr.bf16.vlgmr.msra.gmra.mrb[8].mxu0 %v1940_v49 }
 0x9f3   : > { %v2040_v51 = vpop.f32.mrb[8].mxu0 }
 0x9f4   : > { %v2041_v52 = vadd.f32 %v2040_v51, %v1957_v50  ;;  %v2493_v53 = vpop.f32.mrb[9].mxu0 }
 0x9f5   : > { %v2043_v54 = vpop.f32.mrb[10].mxu0 }
 0x9f6   : > { %2046 = vst [vmem:[%s3584_s5] sm:$0x1] %v2041_v52  ;;  %v2494_v55 = vpop.f32.mrb[11].mxu0 }
 0x9f7 PF: > { %s3825_s0 = sld [smem:[#allocation23_spill]]  ;;  %s3826_s29 = sld [smem:[#allocation39_spill]] }
 0x9f8   : > { %s2060_s2 = sshll.u32 %s3584_s5, 4  ;;  %s3827_s16 = sand.u32 1, %s3118_s19   ;;  %s2061_s2 = int_to_ptr.vmem [resolvable:$true] %s2060_s2 }
 0x9f9   : > { %s2048_s8 = scalar_lea.sflag [#allocation5], %s3827_s16  ;;  %s3020_s24 = scalar_lea.vmem %s2061_s2, 16 }
 0x9fa   : > { %p3021_p5 = scmp.ne.s32.totalorder %s2061_s2, %s3020_s24  ;;  %p3828_p12 = scmp.ne.s32.totalorder %s3807_s14, 0 }
 0x9fb   : > { %s3171_s4 = smov [#allocation15]  }
 0x9fc   : > { %p3022_p10 = pnand %p3021_p5, %p3828_p12  ;;  %s3024_s9 = sshll.u32 %s3171_s4, 4  ;;  %s3025_s9 = int_to_ptr.vmem [resolvable:$false] %s3024_s9 }
 0x9fd   : > { %s2353_s3 = sshll.u32 %s3825_s0, 4  ;;  %s3026_s10 = scalar_lea.vmem %s3025_s9, 32 }
 0x9fe   : > { %s3677_s7 = scalar_lea.hbm %s3826_s29, %s2353_s3  ;;  %p3023_p7 = pneg %p3022_p10 }
 0x9ff   : > { %p3027_p1 = scmp.lt.s32.totalorder %s2061_s2, %s3025_s9  ;;  %p3028_p11 = scmp.lt.s32.totalorder %s3026_s10, %s3020_s24 }
 0xa01   : > { %p3029_p13 = por %p3028_p11, %p3027_p1 }
 0xa03   : > { %p3030_p4 = pnand %p3029_p13, %p3023_p7 }
 0xa05   : > { %3033 = shalt.err (!%p3030_p4)
}
 0xa06   : > { %s3034_s5 = scalar_lea.hbm %s3677_s7, 16  ;;  %s3038_s4 = scalar_lea.hbm %s3826_s29, 32 }
 0xa07   : > { %p3035_p6 = scmp.ne.s32.totalorder %s3677_s7, %s3034_s5  ;;  %p3039_p9 = scmp.lt.u32.totalorder %s3677_s7, %s3826_s29 }
 0xa08   : > { %p3040_p0 = scmp.lt.u32.totalorder %s3038_s4, %s3034_s5  ;;  %p3042_p5 = scmp.lt.u32.totalorder %s3034_s5, %s3677_s7 }
 0xa09   : > { %p3036_p8 = pnand %p3035_p6, %p3828_p12 }
 0xa0a   : > { %p3041_p3 = por %p3040_p0, %p3039_p9 }
 0xa0b   : > { %p3037_p2 = pneg %p3036_p8 }
 0xa0c   : > { %p3043_p10 = por %p3042_p5, %p3041_p3 }
 0xa0e   : > { %p3044_p7 = pnand %p3043_p10, %p3037_p2 }
 0xa10   : > { %3047 = shalt.err (!%p3044_p7)
}
 0xa11   : > { %2525 = dma.vmem_to_hbm [thread:$0]  (%p3828_p12), %s2061_s2, 16, %s3677_s7, %s2048_s8  }
 0xa12 PF: > { %s3829_s10 = sld [smem:[#allocation21_spill]]  ;;  %p2567_p1 = scmp.ge.s32.totalorder %s3154_s28, 2 }
 0xa13   : > { %p3830_p11 = scmp.ne.s32.totalorder %s3808_s6, 0 }
 0xa15   : > { %p2551_p13 = pnand %p2567_p1, %p3830_p11 }
 0xa18   : > { %s2072_s21 = sand.u32 1, %s3829_s10  }
 0xa19   : > { %s2073_s16 = scalar_lea.sflag [#allocation5], %s2072_s21 }
 0xa1a   : > { %3109 = dma.done.wait (!%p2551_p13), %s2073_s16, 16  }
 0xa1b   : > { %3111 = vsyncadd (!%p2551_p13), %s2073_s16, 4294967280  ;;  %s34_s28 = sadd.s32 1, %s3154_s28   ;;  %s3831_s14 = smov %s3844_s25 }
 0xa1c   : > { %p31_p4 = scmp.ge.s32.totalorder %s34_s28, 8   ;;  %s3832_s7 = smov %s3848_s18 }
 0xa1d   : > { %s3833_s18 = smov %s3118_s19  ;;  %s3834_s19 = smov %s3122_s20 }
 0xa1e   : > { %s3835_s20 = smov %s3507_s11  ;;  %s3836_s21 = smov %s3130_s22 }
 0xa1f   : > { %s3837_s22 = smov %s3134_s23  ;;  %s3838_s23 = smov %s3510_s17 }
 0xa20   : > { %s3839_s24 = smov %s3146_s26  ;;  %s3840_s25 = smov %s3150_s27 }
 0xa21   : > { %s3841_s26 = smov %s3831_s14  ;;  %s3842_s27 = smov %s3832_s7 }
 0xa22   :  { %33 = sbr.rel (!%p31_p4) target bundleno = 28 (0x1c), region = 165 }
 0xa29   :  { %2077 = vsyncpa [#allocation4], 1 }
 0xa2a   :  { %2079 = vsyncpa [#allocation4 + $0x1], 1 }
 0xa2b   :  { %2080 = vsyncpa [#allocation7], 1 }
 0xa2c   :  { %2081 = vsyncpa [#allocation10], 1 }
 0xa2d   :  { %2082 = vsyncpa [#allocation13], 1 }
 0xa2e   :  { %2083 = vsyncpa [#allocation5], 1 }
 0xa2f   :  { %2085 = vsyncpa [#allocation5 + $0x1], 1 }

</bundles_post_ra>
